<compile_context>
chip_gen: v7x
topology: tpu7x:2x2x1
jax: 0.10.0
libtpu: 0.0.40
codegen_flags: <defaults>
</compile_context>

<pallas_src>
import jax
import jax.numpy as jnp
import numpy as np
from jax.experimental import pallas as pl
from jax.experimental.pallas import tpu as pltpu


def _make_kernel(N, C, TP, K, radius2, inv_denom, tau, accumulation):
    Kf = float(K)

    def kernel(pc_ref, L_ref, pts_ref, feat_ref, out_ref):
        # pc_ref  : (2, TP)    pixel NDC centers for this tile (row 0 = px, row 1 = py);
        #                      padded pixels sit far outside NDC so they never get candidates
        # L_ref   : (N, N)     strictly-lower-triangular ones, bf16 (precomputed, resident)
        # pts_ref : (1, N, 3)  this batch's points, sorted by ascending z
        # feat_ref: (1, C, N)  this batch's features (channel-major), same sort order
        # out_ref : (1, C, TP) lane-dense output tile
        pc = pc_ref[...]
        px = pc[0:1, :]                      # (1, TP)
        py = pc[1:2, :]

        pts = pts_ref[0]                     # (N, 3)
        x = pts[:, 0:1]                      # (N, 1)
        y = pts[:, 1:2]
        z = pts[:, 2:3]

        dx = x - px                          # (N, TP)
        dy = y - py
        d2 = dx * dx + dy * dy               # squared NDC xy distance (pytorch3d "dists")

        # Candidate mask (inside splat radius, in front of camera) kept as a single 0/1 array;
        # selects below are folded into multiplies to avoid extra materialized (N, TP) tiles.
        candf = ((d2 <= radius2) & (z >= 0.0)).astype(jnp.float32)    # (N, TP)

        # rank[n, p] = number of nearer-in-z candidates at pixel p (exclusive prefix count).
        # bf16 x bf16 -> f32 on the MXU is bit-exact for 0/1 operands and ~3-6x faster than f32.
        L = L_ref[...]                                                # (N, N) bf16
        rank = jnp.dot(L, candf.astype(jnp.bfloat16),
                       preferred_element_type=jnp.float32)            # (N, TP) f32
        # selection weight: 1.0 for the first K candidates (in z order) at each pixel, else 0.0
        selw = candf * (rank < Kf).astype(jnp.float32)

        # alphas = (1 - clamp(dist / r^rad_pow, 1e-3, 1)^0.5)^tau   (tau fast paths skip the pow)
        a = 1.0 - jnp.sqrt(jnp.clip(d2 * inv_denom, 0.001, 1.0))
        if tau == 1.0:
            alpha = a
        elif tau == 2.0:
            alpha = a * a
        else:
            alpha = a ** tau

        if accumulation == "alphacomposite":
            # Exclusive cumulative product of (1 - alpha) over preceding candidates, in log space
            # (MXU prefix-sum + EUP exp). This matmul stays f32: bf16 log-weights would drift past
            # the 1e-4 tolerance; the 0/1 bf16->f32 cast of L is exact and cheap vs the matmul.
            logf = candf * jnp.log(jnp.maximum(1.0 - alpha, 1e-20))
            logT = jnp.dot(L.astype(jnp.float32), logf,
                           preferred_element_type=jnp.float32)
            weights = selw * (alpha * jnp.exp(logT))
        else:  # 'wsum' / 'wsumnorm'
            weights = selw * alpha
            if accumulation == "wsumnorm":
                # TODO(synk): pytorch3d weighted_sum_norm eps/clamp convention may differ slightly.
                wsum = jnp.sum(weights, axis=0, keepdims=True)
                weights = weights * pl.reciprocal(jnp.maximum(wsum, 1e-10), approx=True)

        feats = feat_ref[0]                  # (C, N)
        out_ref[0] = jnp.dot(
            feats, weights, preferred_element_type=jnp.float32
        ).astype(out_ref.dtype)              # (C, TP) — lane-dense, exactly NCHW order

    return kernel


def _tile_config(P, N):
    """Pick a lane-dense pixel tile (multiple of 128), padded pixel extent, and a VMEM limit."""
    kind = ""
    try:
        kind = jax.devices()[0].device_kind.lower()
    except Exception:
        pass
    # v7x has only 64 MiB physical VMEM; treat unknown generations conservatively.
    small_vmem = ("v7" in kind) or ("tpu7" in kind) or (kind == "")
    vmem_limit = (48 << 20) if small_vmem else (96 << 20)
    cap = 1024 if small_vmem else 2048
    # ~6 live (N, TP) f32 temporaries dominate VMEM in the kernel body; keep them well under budget.
    budget = vmem_limit // 4
    max_tp = max(128, budget // (6 * max(N, 1) * 4))
    p128 = ((P + 127) // 128) * 128
    TP = min(p128, cap, max_tp)
    TP = max(128, (TP // 128) * 128)
    P_pad = ((P + TP - 1) // TP) * TP
    return TP, P_pad, vmem_limit


def rasterize_points_xys_blending(
    pts3D,
    src,
    *,
    radius=1.5,
    size=16,
    points_per_pixel=8,
    rad_pow=2,
    tau=1.0,
    accumulation="alphacomposite",
):
    if accumulation not in ("alphacomposite", "wsum", "wsumnorm"):
        raise ValueError(f"unknown accumulation mode: {accumulation!r}")

    bs, N, _ = pts3D.shape
    C = src.shape[-1]
    H = W = int(size)
    P = H * W
    K = int(points_per_pixel)

    r_ndc = float(radius) / float(size) * 2.0
    radius2 = r_ndc * r_ndc
    inv_denom = 1.0 / (r_ndc ** rad_pow)

    TP, P_pad, vmem_limit = _tile_config(P, N)

    # Stable sort by z: candidates per pixel are then already in z-buffer order
    # (ties keep original index order, matching the tie-break of the rasterizer).
    pts_f = pts3D.astype(jnp.float32)
    order = jnp.argsort(pts_f[..., 2], axis=-1, stable=True)                  # (bs, N)
    pts_sorted = jnp.take_along_axis(pts_f, order[..., None], axis=1)         # (bs, N, 3)
    # Gather features directly into channel-major (bs, C, N): one fused gather instead of
    # gather + separate transpose pass over the feature tensor.
    feats_t = jnp.take_along_axis(
        jnp.transpose(src.astype(jnp.float32), (0, 2, 1)), order[:, None, :], axis=2
    )                                                                          # (bs, C, N)

    # Per-pixel NDC centers, computed once (PyTorch3D convention: +X left, +Y up),
    # flattened in row-major pixel order p = row * W + col.  Padded pixels are pushed far
    # outside the NDC cube so they never collect candidates and write zeros.
    rows = jnp.arange(H)
    cols = jnp.arange(W)
    py = (2.0 * (H - 1 - rows) + 1.0) / float(H) - 1.0
    px = (2.0 * (W - 1 - cols) + 1.0) / float(W) - 1.0
    PY, PX = jnp.meshgrid(py, px, indexing="ij")
    pcoords = jnp.stack([PX.reshape(-1), PY.reshape(-1)], axis=0).astype(jnp.float32)  # (2, P)
    if P_pad != P:
        pcoords = jnp.pad(pcoords, ((0, 0), (0, P_pad - P)), constant_values=1.0e4)

    # Strictly-lower-triangular ones matrix, built once in bf16 (exact 0/1), resident in VMEM.
    L = jnp.tril(jnp.ones((N, N), jnp.float32), k=-1).astype(jnp.bfloat16)

    kernel = _make_kernel(N, C, TP, K, radius2, inv_denom, float(tau), accumulation)

    out = pl.pallas_call(
        kernel,
        out_shape=jax.ShapeDtypeStruct((bs, C, P_pad), jnp.float32),
        grid_spec=pltpu.PrefetchScalarGridSpec(
            num_scalar_prefetch=0,
            grid=(bs, P_pad // TP),
            in_specs=[
                pl.BlockSpec((2, TP), lambda b, t: (0, t)),
                pl.BlockSpec((N, N), lambda b, t: (0, 0)),      # constant block -> DMA'd once
                pl.BlockSpec((1, N, 3), lambda b, t: (b, 0, 0)),
                pl.BlockSpec((1, C, N), lambda b, t: (b, 0, 0)),
            ],
            out_specs=pl.BlockSpec((1, C, TP), lambda b, t: (b, 0, t)),
        ),
        compiler_params=pltpu.CompilerParams(
            dimension_semantics=("parallel", "parallel"),
            vmem_limit_bytes=vmem_limit,
        ),
    )(pcoords, L, pts_sorted, feats_t)

    # Output is already channel-major: (bs, C, P_pad) -> slice -> (bs, C, H, W), no transpose pass.
    return out[:, :, :P].reshape(bs, C, H, W)


def reference(
    pts3D,
    src,
    *,
    radius=1.5,
    size=16,
    points_per_pixel=8,
    rad_pow=2,
    tau=1.0,
    accumulation="alphacomposite",
):
    """Pure-JAX reference with the original K-step z-buffer semantics (for validation)."""
    bs, N, _ = pts3D.shape
    C = src.shape[-1]
    H = W = size
    K = points_per_pixel
    r_ndc = float(radius) / float(size) * 2.0
    radius2 = r_ndc * r_ndc
    denom = r_ndc ** rad_pow

    def per_batch(p, f):
        x, y, z = p[:, 0], p[:, 1], p[:, 2]
        rows = jnp.arange(H)
        cols = jnp.arange(W)
        py = (2.0 * (H - 1 - rows) + 1.0) / float(H) - 1.0
        px = (2.0 * (W - 1 - cols) + 1.0) / float(W) - 1.0
        PY, PX = jnp.meshgrid(py, px, indexing="ij")
        PY = PY.reshape(-1, 1)
        PX = PX.reshape(-1, 1)
        d2 = (x[None, :] - PX) ** 2 + (y[None, :] - PY) ** 2
        zb = jnp.broadcast_to(z[None, :], d2.shape)
        cand = (d2 <= radius2) & (zb >= 0.0)
        alpha = (1.0 - jnp.sqrt(jnp.clip(d2 / denom, 0.001, 1.0))) ** float(tau)
        iota = jnp.broadcast_to(jnp.arange(N)[None, :], d2.shape)
        INF = jnp.float32(jnp.inf)
        weights = jnp.zeros_like(d2)
        T = jnp.ones((d2.shape[0], 1), jnp.float32)
        for _ in range(K):
            zm = jnp.where(cand, zb, INF)
            zmin = jnp.min(zm, axis=-1, keepdims=True)
            idx_m = jnp.where((zm == zmin) & cand, iota, N)
            min_idx = jnp.min(idx_m, axis=-1, keepdims=True)
            sel = iota == min_idx
            a_sel = jnp.sum(jnp.where(sel, alpha, 0.0), axis=-1, keepdims=True)
            if accumulation == "alphacomposite":
                weights = weights + jnp.where(sel, alpha * T, 0.0)
                T = T * (1.0 - a_sel)
            else:
                weights = weights + jnp.where(sel, alpha, 0.0)
            cand = cand & (~sel)
        if accumulation == "wsumnorm":
            weights = weights / jnp.maximum(
                jnp.sum(weights, axis=-1, keepdims=True), 1e-10
            )
        return weights @ f                       # (P, C)

    out = jax.vmap(per_batch)(pts3D.astype(jnp.float32), src.astype(jnp.float32))
    return jnp.transpose(out.reshape(bs, H, W, C), (0, 3, 1, 2))


if __name__ == "__main__":
    key = jax.random.PRNGKey(0)
    bs, N, C, size, K = 2, 128, 32, 16, 8

    k1, k2, k3 = jax.random.split(key, 3)
    xy = jax.random.uniform(k1, (bs, N, 2), minval=-1.0, maxval=1.0)
    zc = jax.random.uniform(k2, (bs, N, 1), minval=0.5, maxval=2.0)
    pts3D = jnp.concatenate([xy, zc], axis=-1).astype(jnp.float32)   # (bs, N, 3)
    src = jax.random.normal(k3, (bs, N, C), dtype=jnp.float32)       # (bs, N, C)

    out = rasterize_points_xys_blending(
        pts3D,
        src,
        radius=1.5,
        size=size,
        points_per_pixel=K,
        rad_pow=2,
        tau=1.0,
        accumulation="alphacomposite",
    )
    out = jax.block_until_ready(out)
    assert out.shape == (bs, C, size, size), out.shape

    ref = reference(
        pts3D,
        src,
        radius=1.5,
        size=size,
        points_per_pixel=K,
        rad_pow=2,
        tau=1.0,
        accumulation="alphacomposite",
    )
    np.testing.assert_allclose(np.asarray(out), np.asarray(ref), atol=1e-4, rtol=1e-4)

    print("KERNEL_OK")
</pallas_src>

<mosaic_0001>
module attributes {stable_mosaic.version = 11 : i64} {
  func.func @kernel(%arg0: i32, %arg1: i32, %arg2: memref<2x256xf32, #tpu.memory_space<vmem>>, %arg3: memref<128x128xbf16, #tpu.memory_space<vmem>>, %arg4: memref<1x128x3xf32, #tpu.memory_space<vmem>>, %arg5: memref<1x32x128xf32, #tpu.memory_space<vmem>>, %arg6: memref<1x32x256xf32, #tpu.memory_space<vmem>>) attributes {dimension_semantics = [#tpu.dimension_semantics<parallel>, #tpu.dimension_semantics<parallel>], iteration_bounds = array<i64: 2, 1>, scalar_prefetch = 0 : i64, scratch_operands = 0 : i64, tpu.core_type = #tpu.core_type<tc>, window_params = [{transform_indices = @transform_0, window_bounds = array<i64: 2, 256>}, {pipeline_mode = #tpu.pipeline_mode<synchronous>, transform_indices = @transform_1, window_bounds = array<i64: 128, 128>}, {transform_indices = @transform_2, window_bounds = array<i64: 1, 128, 3>}, {transform_indices = @transform_3, window_bounds = array<i64: 1, 32, 128>}, {transform_indices = @transform_4, window_bounds = array<i64: 1, 32, 256>}]} {
    %c0 = arith.constant 0 : index
    %c0_0 = arith.constant 0 : index
    %0 = vector.load %arg2[%c0, %c0_0] : memref<2x256xf32, #tpu.memory_space<vmem>>, vector<2x256xf32>
    %1 = vector.extract_strided_slice %0 {offsets = [0, 0], sizes = [1, 256], strides = [1, 1]} : vector<2x256xf32> to vector<1x256xf32>
    %2 = vector.extract_strided_slice %0 {offsets = [1, 0], sizes = [1, 256], strides = [1, 1]} : vector<2x256xf32> to vector<1x256xf32>
    %c0_1 = arith.constant 0 : index
    %c0_2 = arith.constant 0 : index
    %c0_3 = arith.constant 0 : index
    %3 = vector.load %arg4[%c0_1, %c0_2, %c0_3] : memref<1x128x3xf32, #tpu.memory_space<vmem>>, vector<1x128x3xf32>
    %4 = vector.shape_cast %3 : vector<1x128x3xf32> to vector<128x3xf32>
    %5 = vector.extract_strided_slice %4 {offsets = [0, 0], sizes = [128, 1], strides = [1, 1]} : vector<128x3xf32> to vector<128x1xf32>
    %6 = vector.extract_strided_slice %4 {offsets = [0, 1], sizes = [128, 1], strides = [1, 1]} : vector<128x3xf32> to vector<128x1xf32>
    %7 = vector.extract_strided_slice %4 {offsets = [0, 2], sizes = [128, 1], strides = [1, 1]} : vector<128x3xf32> to vector<128x1xf32>
    %8 = vector.broadcast %5 : vector<128x1xf32> to vector<128x256xf32>
    %9 = vector.broadcast %1 : vector<1x256xf32> to vector<128x256xf32>
    %10 = arith.subf %8, %9 : vector<128x256xf32>
    %11 = vector.broadcast %6 : vector<128x1xf32> to vector<128x256xf32>
    %12 = vector.broadcast %2 : vector<1x256xf32> to vector<128x256xf32>
    %13 = arith.subf %11, %12 : vector<128x256xf32>
    %14 = arith.mulf %10, %10 : vector<128x256xf32>
    %15 = arith.mulf %13, %13 : vector<128x256xf32>
    %16 = arith.addf %14, %15 : vector<128x256xf32>
    %cst = arith.constant 0.03515625 : f32
    %17 = vector.broadcast %cst : f32 to vector<128x256xf32>
    %18 = arith.cmpf ole, %16, %17 : vector<128x256xf32>
    %cst_4 = arith.constant 0.000000e+00 : f32
    %19 = vector.broadcast %cst_4 : f32 to vector<128x1xf32>
    %20 = arith.cmpf oge, %7, %19 : vector<128x1xf32>
    %21 = vector.broadcast %20 : vector<128x1xi1> to vector<128x256xi1>
    %22 = arith.andi %18, %21 : vector<128x256xi1>
    %23 = arith.extui %22 : vector<128x256xi1> to vector<128x256xi32>
    %24 = arith.sitofp %23 : vector<128x256xi32> to vector<128x256xf32>
    %c0_5 = arith.constant 0 : index
    %c0_6 = arith.constant 0 : index
    %25 = vector.load %arg3[%c0_5, %c0_6] : memref<128x128xbf16, #tpu.memory_space<vmem>>, vector<128x128xbf16>
    %26 = arith.truncf %24 : vector<128x256xf32> to vector<128x256xbf16>
    %cst_7 = arith.constant dense<0.000000e+00> : vector<128x256xf32>
    %27 = tpu.matmul %25, %26, %cst_7 {dimension_numbers = #tpu.dot_dimension_numbers<[1], [0], [0], [1], [0, 0, 1, 1], [], []>} : vector<128x128xbf16>, vector<128x256xbf16>, vector<128x256xf32> -> vector<128x256xf32>
    %cst_8 = arith.constant 8.000000e+00 : f32
    %28 = vector.broadcast %cst_8 : f32 to vector<128x256xf32>
    %29 = arith.cmpf olt, %27, %28 : vector<128x256xf32>
    %30 = arith.extui %29 : vector<128x256xi1> to vector<128x256xi32>
    %31 = arith.sitofp %30 : vector<128x256xi32> to vector<128x256xf32>
    %32 = arith.mulf %24, %31 : vector<128x256xf32>
    %cst_9 = arith.constant 28.4444447 : f32
    %33 = vector.broadcast %cst_9 : f32 to vector<128x256xf32>
    %34 = arith.mulf %16, %33 : vector<128x256xf32>
    %cst_10 = arith.constant 1.000000e-03 : f32
    %cst_11 = arith.constant 1.000000e+00 : f32
    %35 = vector.broadcast %cst_10 : f32 to vector<128x256xf32>
    %36 = arith.maximumf %35, %34 : vector<128x256xf32>
    %37 = vector.broadcast %cst_11 : f32 to vector<128x256xf32>
    %38 = arith.minimumf %37, %36 : vector<128x256xf32>
    %39 = math.sqrt %38 : vector<128x256xf32>
    %cst_12 = arith.constant 1.000000e+00 : f32
    %40 = vector.broadcast %cst_12 : f32 to vector<128x256xf32>
    %41 = arith.subf %40, %39 : vector<128x256xf32>
    %cst_13 = arith.constant 1.000000e+00 : f32
    %42 = vector.broadcast %cst_13 : f32 to vector<128x256xf32>
    %43 = arith.subf %42, %41 : vector<128x256xf32>
    %cst_14 = arith.constant 9.99999968E-21 : f32
    %44 = vector.broadcast %cst_14 : f32 to vector<128x256xf32>
    %45 = arith.maximumf %43, %44 : vector<128x256xf32>
    %46 = math.log %45 : vector<128x256xf32>
    %47 = arith.mulf %24, %46 : vector<128x256xf32>
    %48 = arith.extf %25 : vector<128x128xbf16> to vector<128x128xf32>
    %cst_15 = arith.constant dense<0.000000e+00> : vector<128x256xf32>
    %49 = tpu.matmul %48, %47, %cst_15 {dimension_numbers = #tpu.dot_dimension_numbers<[1], [0], [0], [1], [0, 0, 1, 1], [], []>} : vector<128x128xf32>, vector<128x256xf32>, vector<128x256xf32> -> vector<128x256xf32>
    %50 = math.exp %49 : vector<128x256xf32>
    %51 = arith.mulf %41, %50 : vector<128x256xf32>
    %52 = arith.mulf %32, %51 : vector<128x256xf32>
    %c0_16 = arith.constant 0 : index
    %c0_17 = arith.constant 0 : index
    %c0_18 = arith.constant 0 : index
    %53 = vector.load %arg5[%c0_16, %c0_17, %c0_18] : memref<1x32x128xf32, #tpu.memory_space<vmem>>, vector<1x32x128xf32>
    %54 = vector.shape_cast %53 : vector<1x32x128xf32> to vector<32x128xf32>
    %cst_19 = arith.constant dense<0.000000e+00> : vector<32x256xf32>
    %55 = tpu.matmul %54, %52, %cst_19 {dimension_numbers = #tpu.dot_dimension_numbers<[1], [0], [0], [1], [0, 0, 1, 1], [], []>} : vector<32x128xf32>, vector<128x256xf32>, vector<32x256xf32> -> vector<32x256xf32>
    %c0_20 = arith.constant 0 : index
    %c0_21 = arith.constant 0 : index
    %c0_22 = arith.constant 0 : index
    %56 = vector.load %arg6[%c0_20, %c0_21, %c0_22] : memref<1x32x256xf32, #tpu.memory_space<vmem>>, vector<1x32x256xf32>
    %57 = vector.shape_cast %56 : vector<1x32x256xf32> to vector<32x256xf32>
    %58 = vector.shape_cast %55 : vector<32x256xf32> to vector<1x32x256xf32>
    tpu.vector_store %arg6[%c0_20, %c0_21, %c0_22], %58 {strides = array<i32>} : memref<1x32x256xf32, #tpu.memory_space<vmem>>, vector<1x32x256xf32>,
    return
  }
  func.func @transform_0(%arg0: i32, %arg1: i32) -> (i32, i32) {
    %c0_i32 = arith.constant 0 : i32
    %c0_i32_0 = arith.constant 0 : i32
    return %c0_i32, %arg1 : i32, i32
  }
  func.func @transform_1(%arg0: i32, %arg1: i32) -> (i32, i32) {
    %c0_i32 = arith.constant 0 : i32
    %c0_i32_0 = arith.constant 0 : i32
    %c0_i32_1 = arith.constant 0 : i32
    return %c0_i32, %c0_i32_0 : i32, i32
  }
  func.func @transform_2(%arg0: i32, %arg1: i32) -> (i32, i32, i32) {
    %c0_i32 = arith.constant 0 : i32
    %c0_i32_0 = arith.constant 0 : i32
    %c0_i32_1 = arith.constant 0 : i32
    return %arg0, %c0_i32, %c0_i32_0 : i32, i32, i32
  }
  func.func @transform_3(%arg0: i32, %arg1: i32) -> (i32, i32, i32) {
    %c0_i32 = arith.constant 0 : i32
    %c0_i32_0 = arith.constant 0 : i32
    %c0_i32_1 = arith.constant 0 : i32
    return %arg0, %c0_i32, %c0_i32_0 : i32, i32, i32
  }
  func.func @transform_4(%arg0: i32, %arg1: i32) -> (i32, i32, i32) {
    %c0_i32 = arith.constant 0 : i32
    %c0_i32_0 = arith.constant 0 : i32
    return %arg0, %c0_i32, %arg1 : i32, i32, i32
  }
}

</mosaic_0001>

<bundles_post_ra>
// kernel: tpu_custom_call.1
= control target key start
LH: loop header
LB: loop body
LE: loop exit
PB: predicated region body
PF: predicated region fallthrough
CT: control target
= control target key end

     0   :  { %s5018_s0 = inlined_call_operand.hbm [shape: f32[2,256], index: 0, kind: input, shape index: {}]   ;;  %s5019_s1 = inlined_call_operand.hbm [shape: bf16[128,128], index: 1, kind: input, shape index: {}]   ;;  %s5020_s2 = inlined_call_operand.hbm [shape: f32[2,128,3], index: 2, kind: input, shape index: {}]   ;;  %s5021_s3 = inlined_call_operand.hbm [shape: f32[2,32,128], index: 3, kind: input, shape index: {}]   ;;  %s5022_s4 = inlined_call_operand.hbm [shape: f32[2,32,256], index: 4, kind: output, shape index: {}]  }
   0x1   :  { %5146 = sst [smem:[#allocation68_spill]] %s5018_s0 }
   0x2   :  { %5147 = sst [smem:[#allocation69_spill]] %s5020_s2 }
   0x3   :  { %9 = vsyncpa [#allocation3], 0 }
   0x4   :  { %10 = vsyncpa [#allocation6], 0 }
   0x5   :  { %11 = vsyncpa [#allocation4], 0 }
   0x6   :  { %13 = vsyncpa [#allocation4 + $0x1], 0  ;;  %s3051_s15 = smov 0   ;;  %s3053_s16 = smov 0  }
   0x7   :  { %s3055_s17 = smov 0   ;;  %s3057_s18 = smov 0  }
   0x8   :  { %s3059_s19 = smov 0   ;;  %s3061_s20 = smov 0  }
   0x9 LB: > { %5148 = sst [smem:[#allocation14_spill]] %s3008_s20  ;;  %s3082_s21 = sadd.s32 4294967295, %s3008_s20   ;;  %s3008_s20 = sphi %s3061_s20, %s19_s20   ;;  %s3004_s19 = sphi %s3059_s19, %s5477_s19   ;;  %s3000_s18 = sphi %s3057_s18, %s5476_s18   ;;  %s2996_s17 = sphi %s3055_s17, %s5475_s17   ;;  %s2992_s16 = sphi %s3053_s16, %s5474_s16   ;;  %s2988_s15 = sphi %s3051_s15, %s5473_s15  }
   0xa   : > { %s2266_s22 = sadd.s32 4294967294, %s3008_s20   ;;  %s85_s23 = sadd.s32 1, %s2996_s17 }
   0xb   : > { %p92_p0 = scmp.ne.s32.totalorder %s2996_s17, %s2992_s16  ;;  %p93_p1 = scmp.eq.s32.totalorder %s3008_s20, 0 }
   0xc   : > { %p98_p2 = scmp.ne.s32.totalorder %s2992_s16, %s2988_s15  ;;  %p5023_p3 = scmp.eq.s32.totalorder %s3082_s21, 0 }
   0xd   : > { %p150_p4 = scmp.eq.s32.totalorder %s3082_s21, 1  ;;  %p3093_p5 = por %p93_p1, %p92_p0 }
   0xe   : > { %p156_p6 = scmp.eq.s32.totalorder %s2266_s22, 1  ;;  %p3099_p7 = por %p5023_p3, %p98_p2 }
   0xf   : > { %p3103_p8 = por %p150_p4, %p92_p0  ;;  %p2267_p10 = scmp.ge.s32.totalorder %s3008_s20, 1 }
  0x10   : > { %s5150_s25 = scalar_select %p3099_p7, 1, 0 }
  0x11   : > { %s5151_s26 = scalar_select %p3103_p8, 1, 0 }
  0x12   : > { %p3107_p9 = por %p156_p6, %p98_p2  ;;  %p163_p11 = scmp.lt.s32.totalorder %s3008_s20, 3 }
  0x13   : > { %s3010_s29 = smov [#allocation2]   ;;  %p2509_p1 = scmp.lt.s32.totalorder %s3008_s20, 2 }
  0x14   : > { %s5152_s27 = scalar_select %p3107_p9, 1, 0 }
  0x15   : > { %p3114_p13 = pnand %p2267_p10, %p163_p11  ;;  %s179_s30 = sshll.u32 %s3010_s29, 4  ;;  %s180_s30 = int_to_ptr.vmem [resolvable:$true] %s179_s30 }
  0x16   : > { %p3123_p4 = pnand %p2509_p1, %p3093_p5  ;;  %s31_s7 = sadd.s32 1, %s3004_s19 }
  0x17   : > { %s5153_s28 = scalar_select %p3114_p13, 1, 0 }
  0x18   : > { %p2489_p0 = pneg %p3114_p13  ;;  %p3134_p6 = scmp.ge.s32.totalorder %s31_s7, 2 }
  0x19   : > { %s5154_s5 = scalar_select %p3123_p4, 1, 0 }
  0x1a   : > { %p3129_p2 = pnand %p2489_p0, %p5023_p3  ;;  %s5157_s0 = sld [smem:[#allocation68_spill]] }
  0x1b   : > { %s5156_s8 = scalar_select %p3134_p6, 1, 0 }
  0x1c   : > { %p5029_p10 = pneg %p3129_p2 }
  0x20   : > { %s2802_s12 = scalar_lea.hbm %s5157_s0, 64 }
  0x21   : > { %p2803_p5 = scmp.ne.s32.totalorder %s5157_s0, %s2802_s12  ;;  %p2809_p0 = scmp.lt.u32.totalorder %s2802_s12, %s5157_s0 }
  0x23   : > { %p2805_p11 = pnand %p5029_p10, %p2803_p5 }
  0x25   : > { %p2806_p1 = pneg %p2805_p11 }
  0x27   : > { %p2811_p12 = pnand %p2809_p0, %p2806_p1 }
  0x29   : > { %2814 = shalt.err (!%p2811_p12)
}
  0x2a   : > { %s2815_s29 = scalar_lea.vmem %s180_s30, 64  ;;  %p2823_p7 = scmp.lt.s32.totalorder %s180_s30, %s180_s30 }
  0x2b   : > { %p2816_p3 = scmp.ne.s32.totalorder %s180_s30, %s2815_s29  ;;  %p2824_p13 = scmp.lt.s32.totalorder %s2815_s29, %s2815_s29 }
  0x2d   : > { %p2818_p9 = pnand %p2816_p3, %p5029_p10  ;;  %p2825_p4 = por %p2824_p13, %p2823_p7 }
  0x2f   : > { %p2819_p8 = pneg %p2818_p9 }
  0x31   : > { %p2826_p6 = pnand %p2825_p4, %p2819_p8 }
  0x33   : > { %2829 = shalt.err (!%p2826_p6)
}
  0x34   : > { %2492 = dma.hbm_to_vmem [thread:$0]  (!%p3129_p2), %s5157_s0, 64, %s180_s30, [#allocation3]  }
  0x35   : > { %p5158_p3 = scmp.ne.s32.totalorder %s5156_s8, 0  ;;  %s5028_s12 = sand.u32 1, %s2996_s17  }
  0x36   : > { %s2271_s14 = sshll.u32 %s5028_s12, 7  ;;  %s2392_s22 = sshll.u32 %s3004_s19, 11 }
  0x37   : > { %s5479_s7 = smov (%p5158_p3, %s31_s7), 0  ;;  %s207_s24 = scalar_lea.vmem [#allocation7], %s2271_s14 }
  0x38   : > { %5159 = sst [smem:[#allocation15_spill]] %s5479_s7  ;;  %s82_s13 = ssub.s32 %s3004_s19, %s5479_s7 }
  0x39   : > { %p83_p7 = scmp.eq.s32.totalorder %s82_s13, 0  ;;  %s214_s29 = sshll.u32 %s207_s24, 4  ;;  %s3181_s29 = int_to_ptr.vmem [resolvable:$true] %s214_s29 }
  0x3a   : > { %s5161_s2 = sld [smem:[#allocation69_spill]]  ;;  %s5162_s8 = sand.u32 1, %s3008_s20  }
  0x3b   : > { %s3174_s10 = scalar_select %p83_p7, %s2996_s17, %s85_s23  }
  0x3c   : > { %s3185_s12 = scalar_lea.sflag [#allocation3], %s5162_s8  ;;  %p5163_p9 = scmp.ne.s32.totalorder %s5154_s5, 0 }
  0x3d   : > { %5160 = sst [smem:[#allocation16_spill]] %s3174_s10 }
  0x3e   : > { %p5033_p12 = pneg %p5163_p9 }
  0x40   : > { %s3179_s30 = scalar_lea.hbm %s5161_s2, %s2392_s22  ;;  %s2835_s14 = scalar_lea.hbm %s5161_s2, 4096 }
  0x41   : > { %s2830_s13 = scalar_lea.hbm %s3179_s30, 2048  ;;  %p2836_p6 = scmp.lt.u32.totalorder %s3179_s30, %s5161_s2 }
  0x42   : > { %p2831_p8 = scmp.ne.s32.totalorder %s3179_s30, %s2830_s13  ;;  %p2837_p5 = scmp.lt.u32.totalorder %s2835_s14, %s2830_s13 }
  0x43   : > { %p2839_p1 = scmp.lt.u32.totalorder %s2830_s13, %s3179_s30 }
  0x44   : > { %p2833_p13 = pnand %p5033_p12, %p2831_p8  ;;  %p2838_p11 = por %p2837_p5, %p2836_p6 }
  0x46   : > { %p2834_p4 = pneg %p2833_p13  ;;  %p2840_p0 = por %p2839_p1, %p2838_p11 }
  0x48   : > { %p2841_p3 = pnand %p2840_p0, %p2834_p4 }
  0x4a   : > { %2844 = shalt.err (!%p2841_p3)
}
  0x4b   : > { %s2845_s11 = scalar_lea.vmem %s3181_s29, 2048  ;;  %s3011_s8 = smov [#allocation7]  }
  0x4c   : > { %p2846_p7 = scmp.ne.s32.totalorder %s3181_s29, %s2845_s11  ;;  %s2850_s23 = sshll.u32 %s3011_s8, 4  ;;  %s2851_s23 = int_to_ptr.vmem [resolvable:$false] %s2850_s23 }
  0x4d   : > { %s2852_s9 = scalar_lea.vmem %s2851_s23, 4096  ;;  %p2853_p10 = scmp.lt.s32.totalorder %s3181_s29, %s2851_s23 }
  0x4e   : > { %p2848_p8 = pnand %p2846_p7, %p5033_p12  ;;  %p2854_p6 = scmp.lt.s32.totalorder %s2852_s9, %s2845_s11 }
  0x50   : > { %p2849_p13 = pneg %p2848_p8  ;;  %p2855_p5 = por %p2854_p6, %p2853_p10 }
  0x52   : > { %p2856_p11 = pnand %p2855_p5, %p2849_p13 }
  0x54   : > { %2859 = shalt.err (!%p2856_p11)
}
  0x55   : > { %s3012_s13 = smov 128   ;;  %s3013_s14 = smov 8  }
  0x56   : > { %2499 = dma.hbm_to_vmem [thread:$0]  (!%p5163_p9), %s3179_s30, 2048, %s3181_s29, %s3185_s12, %s3012_s13, %s3012_s13, %s3013_s14  }
  0x57   : > { %s3014_s22 = smov [#allocation5]   ;;  %s5164_s11 = sand.u32 1, %s2996_s17  }
  0x58   : > { %s189_s24 = sshll.u32 %s3014_s22, 4  ;;  %s2274_s8 = sshll.u32 %s5164_s11, 5  ;;  %s190_s24 = int_to_ptr.vmem [resolvable:$true] %s189_s24 }
  0x59   : > { %s2860_s0 = scalar_lea.hbm %s5019_s1, 1024  ;;  %p5165_p4 = pneg %p3129_p2 }
  0x5a   : > { %p2861_p10 = scmp.ne.s32.totalorder %s5019_s1, %s2860_s0  ;;  %p2867_p3 = scmp.lt.u32.totalorder %s2860_s0, %s5019_s1 }
  0x5c   : > { %p2863_p1 = pnand %p2861_p10, %p5165_p4 }
  0x5e   : > { %p2864_p0 = pneg %p2863_p1 }
  0x60   : > { %p2869_p7 = pnand %p2867_p3, %p2864_p0 }
  0x62   : > { %2872 = shalt.err (!%p2869_p7)
}
  0x63   : > { %s2873_s29 = scalar_lea.vmem %s190_s24, 1024  ;;  %p5166_p13 = pmov %p5165_p4 }
  0x64   : > { %p2874_p8 = scmp.ne.s32.totalorder %s190_s24, %s2873_s29  ;;  %p2881_p11 = scmp.lt.s32.totalorder %s190_s24, %s190_s24 }
  0x65   : > { %p2882_p12 = scmp.lt.s32.totalorder %s2873_s29, %s2873_s29 }
  0x66   : > { %p2876_p6 = pnand %p2874_p8, %p5166_p13 }
  0x67   : > { %p2883_p9 = por %p2882_p12, %p2881_p11 }
  0x68   : > { %p2877_p5 = pneg %p2876_p6 }
  0x6a   : > { %p2884_p4 = pnand %p2883_p9, %p2877_p5 }
  0x6c   : > { %2887 = shalt.err (!%p2884_p4)
}
  0x6d   : > { %s3015_s2 = smov 64   ;;  %s3016_s20 = smov 4  }
  0x6e   : > { %2495 = dma.hbm_to_vmem [thread:$0]  (!%p3129_p2), %s5019_s1, 1024, %s190_s24, [#allocation6], %s3015_s2, %s3015_s2, %s3016_s20  }
  0x6f   : > { %s2393_s10 = sshll.u32 %s3004_s19, 9  ;;  %s228_s23 = scalar_lea.vmem [#allocation8], %s2274_s8 }
  0x70   : > { %s3242_s11 = scalar_lea.hbm %s5021_s3, %s2393_s10  ;;  %s235_s9 = sshll.u32 %s228_s23, 4  ;;  %s3244_s9 = int_to_ptr.vmem [resolvable:$true] %s235_s9 }
  0x71   : > { %s2888_s29 = scalar_lea.hbm %s3242_s11, 512  ;;  %p5167_p12 = scmp.ne.s32.totalorder %s5154_s5, 0 }
  0x72   : > { %p2889_p9 = scmp.ne.s32.totalorder %s3242_s11, %s2888_s29  ;;  %s2893_s2 = scalar_lea.hbm %s5021_s3, 1024 }
  0x73   : > { %p5168_p10 = pneg %p5167_p12  ;;  %p2894_p0 = scmp.lt.u32.totalorder %s3242_s11, %s5021_s3 }
  0x74   : > { %p2895_p3 = scmp.lt.u32.totalorder %s2893_s2, %s2888_s29  ;;  %p2897_p8 = scmp.lt.u32.totalorder %s2888_s29, %s3242_s11 }
  0x75   : > { %p2891_p1 = pnand %p2889_p9, %p5168_p10 }
  0x76   : > { %p2896_p7 = por %p2895_p3, %p2894_p0 }
  0x77   : > { %p2892_p2 = pneg %p2891_p1 }
  0x78   : > { %p2898_p13 = por %p2897_p8, %p2896_p7 }
  0x7a   : > { %p2899_p6 = pnand %p2898_p13, %p2892_p2 }
  0x7c   : > { %2902 = shalt.err (!%p2899_p6)
}
  0x7d   : > { %s2903_s8 = scalar_lea.vmem %s3244_s9, 512  ;;  %p5169_p11 = pmov %p5168_p10 }
  0x7e   : > { %p2904_p5 = scmp.ne.s32.totalorder %s3244_s9, %s2903_s8  ;;  %s3017_s7 = smov [#allocation8]  }
  0x7f   : > { %s2908_s10 = sshll.u32 %s3017_s7, 4  ;;  %s2909_s10 = int_to_ptr.vmem [resolvable:$false] %s2908_s10 }
  0x80   : > { %p2906_p4 = pnand %p2904_p5, %p5169_p11  ;;  %s2910_s30 = scalar_lea.vmem %s2909_s10, 1024 }
  0x81   : > { %p2911_p10 = scmp.lt.s32.totalorder %s3244_s9, %s2909_s10  ;;  %p2912_p1 = scmp.lt.s32.totalorder %s2910_s30, %s2903_s8 }
  0x82   : > { %p2907_p9 = pneg %p2906_p4 }
  0x83   : > { %p2913_p0 = por %p2912_p1, %p2911_p10 }
  0x85   : > { %p2914_p3 = pnand %p2913_p0, %p2907_p9 }
  0x87   : > { %2917 = shalt.err (!%p2914_p3)
}
  0x88   : > { %2502 = dma.hbm_to_vmem [thread:$0]  (!%p5167_p12), %s3242_s11, 512, %s3244_s9, %s3185_s12, %s3012_s13, %s3012_s13, %s3013_s14  }
  0x89   : > { %p5170_p2 = scmp.ne.s32.totalorder %s5153_s28, 0 }
  0x8b   : > { %247 = sbr.rel (%p5170_p2) target bundleno = 1047 (0x417), region = 36 }
  0x92   : > { %p5171_p7 = scmp.eq.s32.totalorder %s3082_s21, 0 }
  0x94   : > { %2971 = dma.done.wait (%p5171_p7), [#allocation3], 64   ;;  %p5172_p8 = pmov %p5171_p7 }
  0x95   : > { %p5173_p13 = pmov %p5171_p7 }
  0x96   : > { %2973 = vsyncadd (%p5172_p8), [#allocation3], 4294967232 }
  0x97   : > { %2975 = dma.done.wait (%p5173_p13), [#allocation6], 1024   ;;  %p5174_p6 = pmov %p5171_p7 }
  0x98   : > { %s257_s5 = sand.u32 1, %s3082_s21   ;;  %s3285_s12 = sand.u32 1, %s2992_s16  }
  0x99   : > { %2977 = vsyncadd (%p5174_p6), [#allocation6], 4294966272  ;;  %s2280_s28 = sshll.u32 %s3285_s12, 7  ;;  %s258_s13 = scalar_lea.sflag [#allocation3], %s257_s5 }
  0x9a   : > { %s3288_s14 = scalar_lea.vmem [#allocation7], %s2280_s28  ;;  %p5175_p12 = scmp.ne.s32.totalorder %s5150_s25, 0 }
  0x9c   : > { %2979 = dma.done.wait (%p5175_p12), %s258_s13, 2560  }
  0x9d   : > { %2981 = vsyncadd (%p5175_p12), %s258_s13, 4294964736  ;;  %v3018_v0 = vmov 1   ;;  %v5035_v1 = vmov 0   ;;  %v3298_v2 = vld [vmem:[%s3288_s14 + $0x10] sm:$0xff]  ;;  %v3301_v3 = vld [vmem:[%s3288_s14] sm:$0xff]  ;;  %v3020_v16 = vmov 2   ;;  %v401_v36 = vlaneseq }
  0x9e   : > { %2576 = vset.pattern.permute.xlu0 %v3018_v0  ;;  %2574 = vset.pattern.permute.xlu1 %v3018_v0  ;;  %v310_v4 = vld [vmem:[%s3288_s14 + $0x30] sm:$0xff]  ;;  %v305_v5 = vld [vmem:[%s3288_s14 + $0x8] sm:$0xff]  ;;  %v3311_v7 = vld [vmem:[%s3288_s14 + $0x18] sm:$0xff]  ;;  %v5037_v22 = vmov 0.0   ;;  %vm693_vm7 = vcmp.ge.f32.partialorder %v3301_v3, 0.0  ;;  %vm695_vm8 = vcmp.ge.f32.partialorder %v3298_v2, 0.0 }
  0x9f   : > { %997 = vmatprep.mubr.bf16.mxu0 %v5035_v1  ;;  %460 = vperm.xlu0 %2576, %v3298_v2   ;;  %v3308_v6 = vld [vmem:[%s3288_s14 + $0x50] sm:$0xff]  ;;  %v308_v8 = vld [vmem:[%s3288_s14 + $0x20] sm:$0xff]  ;;  %v3324_v9 = vld [vmem:[%s3288_s14 + $0x28] sm:$0xff]  ;;  %vm694_vm0 = vcmp.ge.f32.partialorder %v305_v5, 0.0  ;;  %vm699_vm2 = vcmp.ge.f32.partialorder %v310_v4, 0.0  ;;  %v709_v27 = vsel %vm693_vm7, 1, %v5035_v1 }
  0xa0   : > { %452 = vperm.xlu1 %2574, %v3301_v3   ;;  %v3330_v10 = vld [vmem:[%s3288_s14 + $0x48] sm:$0xff]  ;;  %v3333_v11 = vld [vmem:[%s3288_s14 + $0x38] sm:$0xff]  ;;  %v312_v13 = vld [vmem:[%s3288_s14 + $0x40] sm:$0xff]  ;;  %v710_v15 = vsel %vm694_vm0, 1, %v5035_v1  ;;  %vm697_vm1 = vcmp.ge.f32.partialorder %v308_v8, 0.0  ;;  %v715_v19 = vsel %vm699_vm2, 1, %v5035_v1  ;;  %1798 = vmatprep.mubr.f32.mxu1 %v5037_v22 }
  0xa1   : > { %v3342_v12 = vld [vmem:[%s3288_s14 + $0x68] sm:$0xff]  ;;  %v318_v14 = vld [vmem:[%s3288_s14 + $0x70] sm:$0xff]  ;;  %v315_v17 = vld [vmem:[%s3288_s14 + $0x58] sm:$0xff]  ;;  %v713_v18 = vsel %vm697_vm1, 1, %v5035_v1  ;;  %vm701_vm3 = vcmp.ge.f32.partialorder %v312_v13, 0.0  ;;  %vm703_vm4 = vcmp.ge.f32.partialorder %v3308_v6, 0.0 }
  0xa2   : > { %v717_v20 = vsel %vm701_vm3, 1, %v5035_v1  ;;  %v316_v21 = vld [vmem:[%s3288_s14 + $0x60] sm:$0xff]  ;;  %v719_v23 = vsel %vm703_vm4, 1, %v5035_v1  ;;  %vm707_vm6 = vcmp.ge.f32.partialorder %v318_v14, 0.0  ;;  %v319_v26 = vld [vmem:[%s3288_s14 + $0x78] sm:$0xff]  ;;  %v711_v28 = vsel %vm695_vm8, 1, %v5035_v1 }
  0xa3   : > { %476 = vperm.xlu0 %2576, %v310_v4   ;;  %vm705_vm5 = vcmp.ge.f32.partialorder %v316_v21, 0.0  ;;  %v723_v25 = vsel %vm707_vm6, 1, %v5035_v1  ;;  %vm696_vm9 = vcmp.ge.f32.partialorder %v3311_v7, 0.0  ;;  %vm698_vm10 = vcmp.ge.f32.partialorder %v3324_v9, 0.0  ;;  %v303_v42 = vld [vmem:[#allocation2] sm:$0xf] }
  0xa4   : > { %456 = vperm.xlu1 %2574, %v305_v5   ;;  %v721_v24 = vsel %vm705_vm5, 1, %v5035_v1  ;;  %v712_v29 = vsel %vm696_vm9, 1, %v5035_v1  ;;  %v714_v30 = vsel %vm698_vm10, 1, %v5035_v1  ;;  %vm700_vm11 = vcmp.ge.f32.partialorder %v3333_v11, 0.0  ;;  %s2281_s21 = sshll.u32 %s3285_s12, 5  ;;  %s2282_s22 = sshll.u32 %s3285_s12, 6 }
  0xa5   : > { %v716_v31 = vsel %vm700_vm11, 1, %v5035_v1  ;;  %vm702_vm12 = vcmp.ge.f32.partialorder %v3330_v10, 0.0  ;;  %vm704_vm13 = vcmp.ge.f32.partialorder %v315_v17, 0.0  ;;  %vm706_vm14 = vcmp.ge.f32.partialorder %v3342_v12, 0.0  ;;  %s270_s25 = scalar_lea.vmem [#allocation8], %s2281_s21  ;;  %s299_s11 = scalar_lea.vmem [#allocation9], %s2282_s22 }
  0xa6   : > { %v718_v32 = vsel %vm702_vm12, 1, %v5035_v1  ;;  %v720_v33 = vsel %vm704_vm13, 1, %v5035_v1  ;;  %v722_v34 = vsel %vm706_vm14, 1, %v5035_v1  ;;  %vm708_vm15 = vcmp.ge.f32.partialorder %v319_v26, 0.0  ;;  %s2140_s23 = sshll.u32 %s299_s11, 4  ;;  %s2394_s9 = sshll.u32 %s3000_s18, 10  ;;  %s4964_s23 = int_to_ptr.vmem [resolvable:$true] %s2140_s23 }
  0xa7   : > { %492 = vperm.xlu0 %2576, %v3308_v6   ;;  %v724_v35 = vsel %vm708_vm15, 1, %v5035_v1  ;;  %v402_v37 = vshrl.u32 %v401_v36, 7  ;;  %s4969_s24 = scalar_lea.hbm %s5022_s4, %s2394_s9  ;;  %s2125_s18 = scalar_lea.sflag [#allocation4], %s3285_s12 }
  0xa8   : > { %2575 = vset.pattern.permute.xlu1 %v5035_v1  ;;  %s2918_s2 = scalar_lea.vmem %s4964_s23, 1024  ;;  %p5467_p11 = scmp.ne.s32.totalorder %s5151_s26, 0 }
  0xa9   : > { %337 = vperm.xlu1 %2575, %v3311_v7   ;;  %v403_v40 = vsub.s32 0, %v402_v37  ;;  %v407_v41 = vsub.s32 2, %v402_v37  ;;  %v517_v45 = vsub.s32 1, %v402_v37  ;;  %v521_v46 = vsub.s32 3, %v402_v37  ;;  %p2919_p5 = scmp.ne.s32.totalorder %s4964_s23, %s2918_s2  ;;  %s3023_s20 = smov [#allocation9]  }
  0xaa   : > { %s2922_s0 = sshll.u32 %s3023_s20, 4  ;;  %s2923_s0 = int_to_ptr.vmem [resolvable:$false] %s2922_s0 }
  0xab   : > { %2585 = vset.pattern.permute.xlu0 %v5035_v1  ;;  %v404_v47 = vrot.slane %v303_v42, %v403_v40  ;;  %v408_v48 = vrot.slane %v303_v42, %v407_v41  ;;  %v518_v50 = vrot.slane %v303_v42, %v517_v45  ;;  %v522_v51 = vrot.slane %v303_v42, %v521_v46  ;;  %p2920_p4 = pnand %p2919_p5, %p5467_p11  ;;  %s2924_s8 = scalar_lea.vmem %s2923_s0, 2048 }
  0xac   : > { %322 = vperm.xlu0 %2585, %v3301_v3   ;;  %p2925_p10 = scmp.lt.s32.totalorder %s4964_s23, %s2923_s0  ;;  %p2926_p1 = scmp.lt.s32.totalorder %s2924_s8, %s2918_s2 }
  0xad   : > { %2577 = vset.pattern.permute.xlu1 %v3018_v0  ;;  %v3390_v53 = vrot.slane %v404_v47, %v403_v40  ;;  %v3392_v54 = vrot.slane %v408_v48, %v403_v40  ;;  %v3394_v55 = vrot.slane %v518_v50, %v517_v45  ;;  %v3396_v56 = vrot.slane %v522_v51, %v517_v45  ;;  %p2921_p9 = pneg %p2920_p4 }
  0xae   : > { %464 = vperm.xlu1 %2577, %v3311_v7   ;;  %p2927_p0 = por %p2926_p1, %p2925_p10 }
  0xb0   : > { %327 = vperm.xlu0 %2585, %v305_v5   ;;  %p2928_p3 = pnand %p2927_p0, %p2921_p9 }
  0xb2   : > { %2578 = vset.pattern.permute.xlu1 %v5035_v1 }
  0xb3   : > { %342 = vperm.xlu1 %2578, %v308_v8  }
  0xb4   : > { %332 = vperm.xlu0 %2585, %v3298_v2  }
  0xb7   : > { %2579 = vset.pattern.permute.xlu1 %v3018_v0 }
  0xb8   : > { %468 = vperm.xlu1 %2579, %v308_v8   ;;  %347 = vperm.xlu0 %2585, %v3324_v9  }
  0xbc   : > { %472 = vperm.xlu1 %2579, %v3324_v9   ;;  %352 = vperm.xlu0 %2585, %v310_v4  }
  0xc0   : > { %2580 = vset.pattern.permute.xlu1 %v5035_v1  ;;  %367 = vperm.xlu0 %2585, %v3330_v10  }
  0xc1   : > { %357 = vperm.xlu1 %2580, %v3333_v11  }
  0xc4   : > { %372 = vperm.xlu0 %2585, %v3308_v6  }
  0xc5   : > { %2581 = vset.pattern.permute.xlu1 %v3018_v0 }
  0xc6   : > { %480 = vperm.xlu1 %2581, %v3333_v11  }
  0xc8   : > { %387 = vperm.xlu0 %2585, %v3342_v12  }
  0xca   : > { %2582 = vset.pattern.permute.xlu1 %v5035_v1 }
  0xcb   : > { %362 = vperm.xlu1 %2582, %v312_v13  }
  0xcc   : > { %392 = vperm.xlu0 %2585, %v318_v14  }
  0xcf   : > { %2583 = vset.pattern.permute.xlu1 %v3018_v0 }
  0xd0   : > { %484 = vperm.xlu1 %2583, %v312_v13   ;;  %2590 = vset.pattern.permute.xlu0 %v3018_v0 }
  0xd1   : > { %508 = vperm.xlu0 %2590, %v318_v14  }
  0xd4   : > { %488 = vperm.xlu1 %2583, %v3330_v10  }
  0xd5   : > { %2593 = vset.pattern.permute.xlu0 %v3020_v16 }
  0xd6   : > { %729 = vperm.xlu0 %2593, %v710_v15  }
  0xd8   : > { %2584 = vset.pattern.permute.xlu1 %v5035_v1 }
  0xd9   : > { %377 = vperm.xlu1 %2584, %v315_v17  }
  0xda   : > { %738 = vperm.xlu0 %2593, %v713_v18  }
  0xdd   : > { %2586 = vset.pattern.permute.xlu1 %v3018_v0 }
  0xde   : > { %496 = vperm.xlu1 %2586, %v315_v17   ;;  %744 = vperm.xlu0 %2593, %v715_v19  }
  0xe2   : > { %2587 = vset.pattern.permute.xlu1 %v5035_v1  ;;  %750 = vperm.xlu0 %2593, %v717_v20  }
  0xe3   : > { %382 = vperm.xlu1 %2587, %v316_v21  }
  0xe6   : > { %756 = vperm.xlu0 %2593, %v719_v23  }
  0xe7   : > { %2588 = vset.pattern.permute.xlu1 %v3018_v0 }
  0xe8   : > { %500 = vperm.xlu1 %2588, %v316_v21  }
  0xea   : > { %762 = vperm.xlu0 %2593, %v721_v24  }
  0xec   : > { %504 = vperm.xlu1 %2588, %v3342_v12  }
  0xee   : > { %768 = vperm.xlu0 %2593, %v723_v25  }
  0xf0   : > { %2589 = vset.pattern.permute.xlu1 %v5035_v1 }
  0xf1   : > { %397 = vperm.xlu1 %2589, %v319_v26  }
  0xf5   : > { %2591 = vset.pattern.permute.xlu1 %v3018_v0 }
  0xf6   : > { %512 = vperm.xlu1 %2591, %v319_v26  }
  0xfa   : > { %2592 = vset.pattern.permute.xlu1 %v3020_v16 }
  0xfb   : > { %726 = vperm.xlu1 %2592, %v709_v27  }
  0xff   : > { %732 = vperm.xlu1 %2592, %v711_v28  }
 0x103   : > { %735 = vperm.xlu1 %2592, %v712_v29  }
 0x107   : > { %741 = vperm.xlu1 %2592, %v714_v30  }
 0x10b   : > { %747 = vperm.xlu1 %2592, %v716_v31  }
 0x10f   : > { %753 = vperm.xlu1 %2592, %v718_v32  }
 0x113   : > { %759 = vperm.xlu1 %2592, %v720_v33  }
 0x117   : > { %765 = vperm.xlu1 %2592, %v722_v34  }
 0x11b   : > { %771 = vperm.xlu1 %2592, %v724_v35  }
 0x11e   : > { %v461_v39 = vpop.permute.xlu0 %460 }
 0x11f   : > { %v453_v38 = vpop.permute.xlu1 %452  ;;  %v537_v23 = vsub.f32 %v461_v39, %v3394_v55  ;;  %v538_v37 = vsub.f32 %v461_v39, %v3396_v56 }
 0x120   : > { %v533_v11 = vsub.f32 %v453_v38, %v3394_v55  ;;  %v534_v12 = vsub.f32 %v453_v38, %v3396_v56 }
 0x121   : > { %v601_v42 = vmul.f32 %v537_v23, %v537_v23 }
 0x122   : > { %v3386_v44 = vpop.permute.xlu0 %476  ;;  %v597_v20 = vmul.f32 %v533_v11, %v533_v11  ;;  %v598_v21 = vmul.f32 %v534_v12, %v534_v12 }
 0x123   : > { %v457_v43 = vpop.permute.xlu1 %456  ;;  %v545_v45 = vsub.f32 %v3386_v44, %v3394_v55  ;;  %v546_v48 = vsub.f32 %v3386_v44, %v3396_v56 }
 0x124   : > { %v535_v25 = vsub.f32 %v457_v43, %v3394_v55  ;;  %v536_v38 = vsub.f32 %v457_v43, %v3396_v56 }
 0x125   : > { %v609_v44 = vmul.f32 %v545_v45, %v545_v45 }
 0x126   : > { %v3388_v49 = vpop.permute.xlu0 %492  ;;  %v599_v47 = vmul.f32 %v535_v25, %v535_v25 }
 0x128   : > { %v338_v52 = vpop.permute.xlu1 %337 }
 0x129   : > { %v425_v57 = vsub.f32 %v338_v52, %v3390_v53  ;;  %v426_v58 = vsub.f32 %v338_v52, %v3392_v54 }
 0x12b   : > { %v323_v59 = vpop.permute.xlu0 %322  ;;  %v571_v63 = vmul.f32 %v425_v57, %v425_v57  ;;  %v572_v0 = vmul.f32 %v426_v58, %v426_v58 }
 0x12c   : > { %v419_v8 = vsub.f32 %v323_v59, %v3390_v53  ;;  %v420_v10 = vsub.f32 %v323_v59, %v3392_v54  ;;  %v602_v59 = vmul.f32 %v538_v37, %v538_v37 }
 0x12d   : > { %v465_v60 = vpop.permute.xlu1 %464 }
 0x12e   : > { %v539_v61 = vsub.f32 %v465_v60, %v3394_v55  ;;  %v540_v62 = vsub.f32 %v465_v60, %v3396_v56  ;;  %v565_v15 = vmul.f32 %v419_v8, %v419_v8  ;;  %v566_v18 = vmul.f32 %v420_v10, %v420_v10 }
 0x12f   : > { %v328_v4 = vpop.permute.xlu0 %327  ;;  %v600_v60 = vmul.f32 %v536_v38, %v536_v38  ;;  %v610_v10 = vmul.f32 %v546_v48, %v546_v48 }
 0x130   : > { %v603_v2 = vmul.f32 %v539_v61, %v539_v61  ;;  %v604_v3 = vmul.f32 %v540_v62, %v540_v62  ;;  %v421_v26 = vsub.f32 %v328_v4, %v3390_v53  ;;  %v3419_v30 = vadd.f32 %v597_v20, %v565_v15 }
 0x131   : > { %v422_v31 = vsub.f32 %v328_v4, %v3392_v54  ;;  %v3422_v34 = vadd.f32 %v598_v21, %v566_v18  ;;  %v553_v61 = vsub.f32 %v3388_v49, %v3394_v55 }
 0x132   : > { %v3402_v5 = vadd.f32 %v603_v2, %v571_v63  ;;  %v3404_v6 = vadd.f32 %v604_v3, %v572_v0  ;;  %v343_v7 = vpop.permute.xlu1 %342  ;;  %v567_v46 = vmul.f32 %v421_v26, %v421_v26  ;;  %v1206_v50 = vmul.f32 28.444445, %v3419_v30 }
 0x133   : > { %v333_v9 = vpop.permute.xlu0 %332  ;;  %v427_v13 = vsub.f32 %v343_v7, %v3390_v53  ;;  %v428_v16 = vsub.f32 %v343_v7, %v3392_v54  ;;  %v568_v51 = vmul.f32 %v422_v31, %v422_v31  ;;  %v1207_v39 = vmul.f32 28.444445, %v3422_v34 }
 0x134   : > { %v423_v35 = vsub.f32 %v333_v9, %v3390_v53  ;;  %v424_v43 = vsub.f32 %v333_v9, %v3392_v54  ;;  %v1212_v62 = vmul.f32 28.444445, %v3402_v5  ;;  %v554_v63 = vsub.f32 %v3388_v49, %v3396_v56 }
 0x135   : > { %v573_v27 = vmul.f32 %v427_v13, %v427_v13  ;;  %v574_v32 = vmul.f32 %v428_v16, %v428_v16  ;;  %v1213_v0 = vmul.f32 28.444445, %v3404_v6  ;;  %v3447_v2 = vadd.f32 %v599_v47, %v567_v46 }
 0x136   : > { %v569_v57 = vmul.f32 %v423_v35, %v423_v35  ;;  %v1238_v3 = vmax.f32 %v1206_v50, 0.001  ;;  %v3449_v4 = vadd.f32 %v600_v60, %v568_v51  ;;  %v1239_v11 = vmax.f32 %v1207_v39, 0.001 }
 0x137   : > { %v469_v14 = vpop.permute.xlu1 %468  ;;  %v3412_v17 = vpop.permute.xlu0 %347  ;;  %v570_v12 = vmul.f32 %v424_v43, %v424_v43  ;;  %v3458_v49 = vmul.f32 %v553_v61, %v553_v61  ;;  %v1244_v15 = vmax.f32 %v1212_v62, 0.001  ;;  %v1245_v20 = vmax.f32 %v1213_v0, 0.001 }
 0x138   : > { %v541_v19 = vsub.f32 %v469_v14, %v3394_v55  ;;  %v542_v24 = vsub.f32 %v469_v14, %v3396_v56  ;;  %v3454_v13 = vadd.f32 %v601_v42, %v569_v57  ;;  %v429_v16 = vsub.f32 %v3412_v17, %v3390_v53 }
 0x139   : > { %v1208_v21 = vmul.f32 28.444445, %v3447_v2  ;;  %v1209_v25 = vmul.f32 28.444445, %v3449_v4  ;;  %v3474_v31 = vadd.f32 %v602_v59, %v570_v12  ;;  %v3481_v46 = vmin.f32 %v1244_v15, 1.0 }
 0x13a   : > { %v605_v28 = vmul.f32 %v541_v19, %v541_v19  ;;  %v606_v33 = vmul.f32 %v542_v24, %v542_v24  ;;  %v3463_v19 = vmul.f32 %v554_v63, %v554_v63  ;;  %v3467_v24 = vmin.f32 %v1238_v3, 1.0 }
 0x13b   : > { %v473_v29 = vpop.permute.xlu1 %472  ;;  %v353_v41 = vpop.permute.xlu0 %352  ;;  %v575_v37 = vmul.f32 %v429_v16, %v429_v16  ;;  %v3483_v47 = vmin.f32 %v1245_v20, 1.0  ;;  %v1240_v48 = vmax.f32 %v1208_v21, 0.001  ;;  %v1241_v51 = vmax.f32 %v1209_v25, 0.001 }
 0x13c   : > { %v3425_v36 = vadd.f32 %v605_v28, %v573_v27  ;;  %v3429_v40 = vadd.f32 %v606_v33, %v574_v32  ;;  %v431_v58 = vsub.f32 %v353_v41, %v3390_v53  ;;  %v432_v7 = vsub.f32 %v353_v41, %v3392_v54  ;;  %5176 = vst [vmem:[#allocation17_spill] sm:$0xff] %v3467_v24 }
 0x13d   : > { %v543_v18 = vsub.f32 %v473_v29, %v3394_v55  ;;  %v3472_v28 = vmin.f32 %v1239_v11, 1.0  ;;  %v1210_v32 = vmul.f32 28.444445, %v3454_v13  ;;  %v430_v33 = vsub.f32 %v3412_v17, %v3392_v54  ;;  %5178 = vst [vmem:[#allocation19_spill] sm:$0xff] %v3483_v47 }
 0x13e   : > { %v577_v8 = vmul.f32 %v431_v58, %v431_v58  ;;  %v1214_v23 = vmul.f32 28.444445, %v3425_v36  ;;  %v578_v26 = vmul.f32 %v432_v7, %v432_v7  ;;  %v1215_v35 = vmul.f32 28.444445, %v3429_v40 }
 0x13f   : > { %v3452_v9 = vpop.permute.xlu0 %367  ;;  %5177 = vst [vmem:[#allocation18_spill] sm:$0xff] %v3472_v28  ;;  %v544_v38 = vsub.f32 %v473_v29, %v3396_v56  ;;  %v607_v41 = vmul.f32 %v543_v18, %v543_v18  ;;  %2610 = vrsqrt.f32 %v3467_v24  ;;  %v1211_v29 = vmul.f32 28.444445, %v3474_v31 }
 0x140   : > { %v3436_v52 = vpop.permute.xlu1 %357  ;;  %v3470_v27 = vadd.f32 %v609_v44, %v577_v8  ;;  %v1246_v50 = vmax.f32 %v1214_v23, 0.001  ;;  %v3486_v39 = vadd.f32 %v610_v10, %v578_v26  ;;  %2612 = vrsqrt.f32 %v3472_v28 }
 0x141   : > { %v1242_v43 = vmax.f32 %v1210_v32, 0.001  ;;  %v1247_v58 = vmax.f32 %v1215_v35, 0.001  ;;  %v576_v59 = vmul.f32 %v430_v33, %v430_v33  ;;  %v608_v60 = vmul.f32 %v544_v38, %v544_v38 }
 0x142   : > { %v1218_v17 = vmul.f32 28.444445, %v3470_v27  ;;  %v3492_v61 = vadd.f32 %v607_v41, %v575_v37  ;;  %2614 = vrsqrt.f32 %v3481_v46  ;;  %v3495_v62 = vmin.f32 %v1240_v48, 1.0 }
 0x143   : > { %v373_v42 = vpop.permute.xlu0 %372  ;;  %v3497_v44 = vmin.f32 %v1246_v50, 1.0  ;;  %2616 = vrsqrt.f32 %v3483_v47  ;;  %v3501_v0 = vmin.f32 %v1241_v51, 1.0  ;;  %v1219_v3 = vmul.f32 28.444445, %v3486_v39 }
 0x144   : > { %v439_v57 = vsub.f32 %v373_v42, %v3390_v53  ;;  %5179 = vst [vmem:[#allocation20_spill] sm:$0xff] %v3492_v61  ;;  %5180 = vst [vmem:[#allocation21_spill] sm:$0xff] %v3495_v62  ;;  %v440_v63 = vsub.f32 %v373_v42, %v3392_v54  ;;  %v1250_v7 = vmax.f32 %v1218_v17, 0.001  ;;  %v1243_v10 = vmax.f32 %v1211_v29, 0.001 }
 0x145   : > { %v3456_v14 = vpop.permute.xlu1 %480  ;;  %5181 = vst [vmem:[#allocation22_spill] sm:$0xff] %v3501_v0  ;;  %v3504_v11 = vmin.f32 %v1242_v43, 1.0  ;;  %v3507_v16 = vmin.f32 %v1247_v58, 1.0  ;;  %v3509_v18 = vadd.f32 %v608_v60, %v576_v59  ;;  %v1216_v20 = vmul.f32 28.444445, %v3492_v61 }
 0x146   : > { %v585_v12 = vmul.f32 %v439_v57, %v439_v57  ;;  %2618 = vrsqrt.f32 %v3497_v44  ;;  %v586_v23 = vmul.f32 %v440_v63, %v440_v63  ;;  %v547_v25 = vsub.f32 %v3456_v14, %v3394_v55 }
 0x147   : > { %5182 = vst [vmem:[#allocation23_spill] sm:$0xff] %v3509_v18  ;;  %v1251_v32 = vmax.f32 %v1219_v3, 0.001  ;;  %v3517_v33 = vmin.f32 %v1250_v7, 1.0  ;;  %v433_v35 = vsub.f32 %v3436_v52, %v3390_v53  ;;  %v548_v41 = vsub.f32 %v3456_v14, %v3396_v56  ;;  %v388_v14 = vpop.permute.xlu0 %387 }
 0x148   : > { %v3523_v38 = vadd.f32 %v3458_v49, %v585_v12  ;;  %2620 = vrsqrt.f32 %v3507_v16  ;;  %v1217_v50 = vmul.f32 28.444445, %v3509_v18  ;;  %v434_v43 = vsub.f32 %v3436_v52, %v3392_v54 }
 0x149   : > { %v3527_v48 = vpop.eup %2610  ;;  %v3536_v49 = vadd.f32 %v3463_v19, %v586_v23  ;;  %v611_v57 = vmul.f32 %v547_v25, %v547_v25  ;;  %v3540_v59 = vmin.f32 %v1243_v10, 1.0  ;;  %v3542_v60 = vmin.f32 %v1251_v32, 1.0 }
 0x14a   : > { %v363_v45 = vpop.permute.xlu1 %362  ;;  %5183 = vst [vmem:[#allocation24_spill] sm:$0xff] %v3523_v38  ;;  %5184 = vst [vmem:[#allocation25_spill] sm:$0xff] %v3527_v48  ;;  %v3531_v29 = vpop.eup %2612  ;;  %v579_v63 = vmul.f32 %v433_v35, %v433_v35  ;;  %2622 = vrsqrt.f32 %v3517_v33  ;;  %v1226_v52 = vmul.f32 28.444445, %v3523_v38  ;;  %v1248_v10 = vmax.f32 %v1216_v20, 0.001 }
 0x14b   : > { %v435_v15 = vsub.f32 %v363_v45, %v3390_v53  ;;  %v436_v21 = vsub.f32 %v363_v45, %v3392_v54  ;;  %5185 = vst [vmem:[#allocation26_spill] sm:$0xff] %v3531_v29  ;;  %5186 = vst [vmem:[#allocation27_spill] sm:$0xff] %v3536_v49  ;;  %2624 = vrsqrt.f32 %v3495_v62  ;;  %v580_v23 = vmul.f32 %v434_v43, %v434_v43  ;;  %v393_v20 = vpop.permute.xlu0 %392 }
 0x14c   : > { %v3546_v7 = vpop.eup %2614  ;;  %v1227_v25 = vmul.f32 28.444445, %v3536_v49  ;;  %2626 = vrsqrt.f32 %v3501_v0  ;;  %v438_v43 = vsub.f32 %v3452_v9, %v3392_v54  ;;  %v448_v1 = vsub.f32 %v393_v20, %v3392_v54 }
 0x14d   : > { %v581_v42 = vmul.f32 %v435_v15, %v435_v15  ;;  %v582_v51 = vmul.f32 %v436_v21, %v436_v21  ;;  %5187 = vst [vmem:[#allocation28_spill] sm:$0xff] %v3546_v7  ;;  %v3551_v12 = vpop.eup %2616  ;;  %v1249_v15 = vmax.f32 %v1217_v50, 0.001  ;;  %2628 = vrsqrt.f32 %v3542_v60 }
 0x14e   : > { %5188 = vst [vmem:[#allocation29_spill] sm:$0xff] %v3551_v12  ;;  %2630 = vrsqrt.f32 %v3504_v11  ;;  %vm1360_vm0 = vcmp.eq.f32.partialorder %v3497_v44, inf  ;;  %vm1367_vm1 = vcmp.eq.f32.partialorder %v3507_v16, inf  ;;  %vm1388_vm2 = vcmp.eq.f32.partialorder %v3517_v33, inf }
 0x14f   : > { %v485_v8 = vpop.permute.xlu1 %484  ;;  %2632 = vrsqrt.f32 %v3540_v59  ;;  %vm1362_vm3 = vcmp.eq.f32.partialorder %v3497_v44, 0.0  ;;  %vm1369_vm4 = vcmp.eq.f32.partialorder %v3507_v16, 0.0  ;;  %v1391_v48 = vand.u32 2147483648, %v3517_v33 }
 0x150   : > { %v549_v26 = vsub.f32 %v485_v8, %v3394_v55  ;;  %v550_v37 = vsub.f32 %v485_v8, %v3396_v56  ;;  %v612_v8 = vmul.f32 %v548_v41, %v548_v41  ;;  %v2619_v41 = vpop.eup %2618  ;;  %v509_v49 = vpop.permute.xlu0 %508  ;;  %vm1390_vm5 = vcmp.eq.f32.partialorder %v3517_v33, 0.0 }
 0x151   : > { %v1359_v38 = vmul.f32 %v2619_v41, %v3497_v44  ;;  %v561_v41 = vsub.f32 %v509_v49, %v3394_v55  ;;  %vm1395_vm6 = vcmp.eq.f32.partialorder %v3542_v60, inf  ;;  %vm1397_vm7 = vcmp.eq.f32.partialorder %v3542_v60, 0.0 }
 0x152   : > { %v613_v45 = vmul.f32 %v549_v26, %v549_v26  ;;  %v614_v17 = vmul.f32 %v550_v37, %v550_v37  ;;  %v3556_v26 = vadd.f32 %v611_v57, %v579_v63  ;;  %v3572_v57 = vmin.f32 %v1249_v15, 1.0 }
 0x153   : > { %v489_v37 = vpop.permute.xlu1 %488  ;;  %v1259_v63 = vmax.f32 %v1227_v25, 0.001  ;;  %v3588_v25 = vmul.f32 %v438_v43, %v438_v43  ;;  %vm663_vm13 = vcmp.le.f32.partialorder %v3447_v2, 0.03515625  ;;  %vm669_vm15 = vcmp.le.f32.partialorder %v3425_v36, 0.03515625 }
 0x154   : > { %v3538_v58 = vadd.f32 %v613_v45, %v581_v42  ;;  %v3544_v3 = vadd.f32 %v614_v17, %v582_v51  ;;  %5189 = vst [vmem:[#allocation30_spill] sm:$0xff] %v3556_v26  ;;  %v1258_v42 = vmax.f32 %v1226_v52, 0.001  ;;  %v3560_v45 = vadd.f32 %v612_v8, %v580_v23  ;;  %5192 = vst [vmem:[#allocation33_spill] sm:$0xff] %v3572_v57  ;;  %v2621_v8 = vpop.eup %2620 }
 0x155   : > { %v3565_v51 = vmin.f32 %v1248_v10, 1.0  ;;  %v437_v17 = vsub.f32 %v3452_v9, %v3390_v53  ;;  %v1220_v52 = vmul.f32 28.444445, %v3556_v26  ;;  %v447_v10 = vsub.f32 %v393_v20, %v3390_v53 }
 0x156   : > { %v1222_v19 = vmul.f32 28.444445, %v3538_v58  ;;  %v1223_v21 = vmul.f32 28.444445, %v3544_v3  ;;  %5190 = vst [vmem:[#allocation31_spill] sm:$0xff] %v3560_v45 }
 0x157   : > { %5191 = vst [vmem:[#allocation32_spill] sm:$0xff] %v3565_v51  ;;  %v1221_v9 = vmul.f32 28.444445, %v3560_v45  ;;  %v3586_v15 = vmul.f32 %v437_v17, %v437_v17  ;;  %v1366_v17 = vmul.f32 %v2621_v8, %v3507_v16 }
 0x158   : > { %v1254_v32 = vmax.f32 %v1222_v19, 0.001  ;;  %v1255_v35 = vmax.f32 %v1223_v21, 0.001  ;;  %v445_v19 = vsub.f32 %v388_v14, %v3390_v53  ;;  %v446_v21 = vsub.f32 %v388_v14, %v3392_v54  ;;  %v3590_v22 = vpop.permute.xlu1 %377  ;;  %v2623_v14 = vpop.eup %2622 }
 0x159   : > { %v3596_v20 = vpop.eup %2624  ;;  %v1253_v43 = vmax.f32 %v1221_v9, 0.001  ;;  %v551_v9 = vsub.f32 %v489_v37, %v3394_v55  ;;  %v1368_v18 = vsel %vm1367_vm1, %v3507_v16, %v1366_v17 }
 0x15a   : > { %v3562_v50 = vmin.f32 %v1254_v32, 1.0  ;;  %v3578_v23 = vmin.f32 %v1255_v35, 1.0  ;;  %v3580_v32 = vmin.f32 %v1258_v42, 1.0  ;;  %v3593_v35 = vmin.f32 %v1259_v63, 1.0  ;;  %5193 = vst [vmem:[#allocation34_spill] sm:$0xff] %v3596_v20 }
 0x15b   : > { %v1252_v42 = vmax.f32 %v1220_v52, 0.001  ;;  %v3598_v45 = vmul.f32 %v445_v19, %v445_v19  ;;  %v3600_v26 = vmul.f32 %v446_v21, %v446_v21  ;;  %v3607_v63 = vmul.f32 %v448_v1, %v448_v1  ;;  %v3609_v52 = vpop.eup %2626 }
 0x15c   : > { %2634 = vrsqrt.f32 %v3562_v50  ;;  %5194 = vst [vmem:[#allocation35_spill] sm:$0xff] %v3609_v52  ;;  %v3613_v19 = vsub.f32 %v509_v49, %v3396_v56  ;;  %v1387_v21 = vmul.f32 %v2623_v14, %v3517_v33  ;;  %v1363_v49 = vand.u32 2147483648, %v3497_v44 }
 0x15d   : > { %2636 = vrsqrt.f32 %v3565_v51  ;;  %v2629_v51 = vpop.eup %2628  ;;  %v3618_v8 = vmin.f32 %v1252_v42, 1.0  ;;  %v497_v61 = vpop.permute.xlu1 %496  ;;  %v552_v42 = vsub.f32 %v489_v37, %v3396_v56  ;;  %v3639_v52 = vmin.f32 %v1253_v43, 1.0 }
 0x15e   : > { %2638 = vrsqrt.f32 %v3572_v57  ;;  %v3605_v57 = vmul.f32 %v447_v10, %v447_v10  ;;  %v1361_v10 = vsel %vm1360_vm0, %v3497_v44, %v1359_v38  ;;  %v3622_v1 = vpop.eup %2630  ;;  %v1370_v38 = vand.u32 2147483648, %v3507_v16 }
 0x15f   : > { %2640 = vrsqrt.f32 %v3578_v23  ;;  %v3628_v14 = vpop.eup %2632  ;;  %v1389_v20 = vsel %vm1388_vm2, %v3517_v33, %v1387_v21  ;;  %v3634_v62 = vsel %vm1362_vm3, %v1363_v49, %v1361_v10  ;;  %v1394_v17 = vmul.f32 %v2629_v51, %v3542_v60 }
 0x160   : > { %2642 = vrsqrt.f32 %v3580_v32  ;;  %5195 = vst [vmem:[#allocation36_spill] sm:$0xff] %v3634_v62  ;;  %v3641_v0 = vsel %vm1369_vm4, %v1370_v38, %v1368_v18  ;;  %v615_v37 = vmul.f32 %v551_v9, %v551_v9  ;;  %v3647_v21 = vsel %vm1390_vm5, %v1391_v48, %v1389_v20 }
 0x161   : > { %2644 = vrsqrt.f32 %v3593_v35  ;;  %5196 = vst [vmem:[#allocation37_spill] sm:$0xff] %v3641_v0  ;;  %5198 = vst [vmem:[#allocation39_spill] sm:$0xff] %v3647_v21  ;;  %v1396_v16 = vsel %vm1395_vm6, %v3542_v60, %v1394_v17  ;;  %v1398_v10 = vand.u32 2147483648, %v3542_v60  ;;  %v3653_v51 = vmul.f32 %v561_v41, %v561_v41 }
 0x162   : > { %v555_v43 = vsub.f32 %v497_v61, %v3394_v55  ;;  %v616_v38 = vmul.f32 %v552_v42, %v552_v42  ;;  %v383_v17 = vpop.permute.xlu1 %382  ;;  %v441_v41 = vsub.f32 %v3590_v22, %v3390_v53  ;;  %v442_v18 = vsub.f32 %v3590_v22, %v3392_v54  ;;  %v3671_v42 = vpop.permute.xlu0 %729 }
 0x163   : > { %v3659_v48 = vsel %vm1397_vm7, %v1398_v10, %v1396_v16  ;;  %vm1416_vm8 = vcmp.eq.f32.partialorder %v3562_v50, inf  ;;  %v3669_v60 = vadd.f32 %v615_v37, %v3586_v15  ;;  %v556_v16 = vsub.f32 %v497_v61, %v3396_v56 }
 0x164   : > { %5200 = vst [vmem:[#allocation41_spill] sm:$0xff] %v3659_v48  ;;  %v5201_v29 = vsub.f32 1.0, %v3634_v62  ;;  %v619_v22 = vmul.f32 %v555_v43, %v555_v43  ;;  %v5202_v15 = vsub.f32 1.0, %v3641_v0  ;;  %vm1418_vm9 = vcmp.eq.f32.partialorder %v3562_v50, 0.0 }
 0x165   : > { %vm1423_vm10 = vcmp.eq.f32.partialorder %v3578_v23, inf  ;;  %v1426_v61 = vand.u32 2147483648, %v3578_v23  ;;  %vm1425_vm11 = vcmp.eq.f32.partialorder %v3578_v23, 0.0  ;;  %v587_v43 = vmul.f32 %v441_v41, %v441_v41 }
 0x166   : > { %v2635_v24 = vpop.eup %2634  ;;  %v1566_v28 = vsub.f32 1.0, %v5201_v29  ;;  %v1567_v37 = vsub.f32 1.0, %v5202_v15  ;;  %v3698_v7 = vmul.f32 %v3613_v19, %v3613_v19  ;;  %2646 = vrsqrt.f32 %v3618_v8 }
 0x167   : > { %v3645_v44 = vpop.eup %2636  ;;  %v1415_v20 = vmul.f32 %v2635_v24, %v3562_v50  ;;  %v501_v62 = vpop.permute.xlu1 %500  ;;  %vm774_vm12 = vcmp.eq.s32.totalorder %v3671_v42, 1  ;;  %v443_v19 = vsub.f32 %v383_v17, %v3390_v53  ;;  %vm1444_vm0 = vcmp.eq.f32.partialorder %v3580_v32, inf }
 0x168   : > { %5197 = vst [vmem:[#allocation38_spill] sm:$0xff] %v3645_v44  ;;  %v3651_v49 = vpop.eup %2638  ;;  %v1599_v41 = vmax.f32 %v1567_v37, 1e-20  ;;  %vm1446_vm1 = vcmp.eq.f32.partialorder %v3580_v32, 0.0  ;;  %vm1451_vm2 = vcmp.eq.f32.partialorder %v3593_v35, inf  ;;  %vm1453_vm3 = vcmp.eq.f32.partialorder %v3593_v35, 0.0  ;;  %vm3757_vm4 = vmand %vm663_vm13, %vm774_vm12 }
 0x169   : > { %5199 = vst [vmem:[#allocation40_spill] sm:$0xff] %v3651_v49  ;;  %v2641_v33 = vpop.eup %2640  ;;  %v1417_v10 = vsel %vm1416_vm8, %v3562_v50, %v1415_v20  ;;  %v1419_v49 = vand.u32 2147483648, %v3562_v50  ;;  %v5203_v20 = vsub.f32 1.0, %v3647_v21  ;;  %vm670_vm6 = vcmp.le.f32.partialorder %v3429_v40, 0.03515625 }
 0x16a   : > { %v2643_v44 = vpop.eup %2642  ;;  %v1422_v12 = vmul.f32 %v2641_v33, %v3578_v23  ;;  %v5205_v33 = vsub.f32 1.0, %v3659_v48 }
 0x16b   : > { %v2645_v9 = vpop.eup %2644  ;;  %v1570_v24 = vsub.f32 1.0, %v5203_v20  ;;  %v3687_v47 = vsel %vm1418_vm9, %v1419_v49, %v1417_v10  ;;  %v3701_v49 = vadd.f32 %v616_v38, %v3588_v25  ;;  %v1598_v10 = vmax.f32 %v1566_v28, 1e-20 }
 0x16c   : > { %5204 = vst [vmem:[#allocation42_spill] sm:$0xff] %v3687_v47  ;;  %v1424_v29 = vsel %vm1423_vm10, %v3578_v23, %v1422_v12  ;;  %v1571_v0 = vsub.f32 1.0, %v5205_v33  ;;  %v5063_v50 = vsub.f32 1.0, %v3687_v47  ;;  %v620_v12 = vmul.f32 %v556_v16, %v556_v16  ;;  %v3704_v23 = vpop.permute.xlu0 %738 }
 0x16d   : > { %v3693_v15 = vsel %vm1425_vm11, %v1426_v61, %v1424_v29  ;;  %v3706_v20 = vadd.f32 %v619_v22, %v587_v43  ;;  %v588_v29 = vmul.f32 %v442_v18, %v442_v18  ;;  %v1602_v33 = vmax.f32 %v1570_v24, 1e-20  ;;  %v505_v43 = vpop.permute.xlu1 %504 }
 0x16e   : > { %5206 = vst [vmem:[#allocation43_spill] sm:$0xff] %v3693_v15  ;;  %v5064_v61 = vsub.f32 1.0, %v3693_v15  ;;  %v3712_v25 = vmul.f32 28.444445, %v3669_v60  ;;  %v1603_v28 = vmax.f32 %v1571_v0, 1e-20  ;;  %v444_v16 = vsub.f32 %v383_v17, %v3392_v54 }
 0x16f   : > { %5207 = vst [vmem:[#allocation44_spill] sm:$0xff] %v3706_v20  ;;  %v1574_v38 = vsub.f32 1.0, %v5063_v50  ;;  %v3719_v22 = vmul.f32 28.444445, %v3701_v49  ;;  %vm777_vm14 = vcmp.eq.s32.totalorder %v3704_v23, 1  ;;  %2648 = vlog2.f32 %v1598_v10  ;;  %v5307_v23 = vld [vmem:[#allocation24_spill] sm:$0xff] }
 0x170   : > { %v3722_v18 = vadd.f32 %v620_v12, %v588_v29  ;;  %2650 = vlog2.f32 %v1599_v41  ;;  %v3725_v24 = vmul.f32 28.444445, %v3706_v20  ;;  %v1575_v0 = vsub.f32 1.0, %v5064_v61  ;;  %vm3785_vm5 = vmand %vm669_vm15, %vm777_vm14 }
 0x171   : > { %v1443_v37 = vmul.f32 %v2643_v44, %v3580_v32  ;;  %2652 = vlog2.f32 %v1602_v33  ;;  %v589_v17 = vmul.f32 %v443_v19, %v443_v19  ;;  %v1450_v50 = vmul.f32 %v2645_v9, %v3593_v35  ;;  %v745_v19 = vpop.permute.xlu0 %744  ;;  %vm3806_vm8 = vmand %vm670_vm6, %vm777_vm14 }
 0x172   : > { %5208 = vst [vmem:[#allocation45_spill] sm:$0xff] %v3722_v18  ;;  %v557_v10 = vsub.f32 %v501_v62, %v3394_v55  ;;  %2654 = vlog2.f32 %v1603_v28  ;;  %v1606_v12 = vmax.f32 %v1574_v38, 1e-20  ;;  %v590_v41 = vmul.f32 %v444_v16, %v444_v16 }
 0x173   : > { %v558_v29 = vsub.f32 %v501_v62, %v3396_v56  ;;  %v559_v44 = vsub.f32 %v505_v43, %v3394_v55  ;;  %v1607_v15 = vmax.f32 %v1575_v0, 1e-20  ;;  %v1445_v33 = vsel %vm1444_vm0, %v3580_v32, %v1443_v37 }
 0x174   : > { %v621_v61 = vmul.f32 %v557_v10, %v557_v10  ;;  %v1447_v28 = vand.u32 2147483648, %v3580_v32  ;;  %v1452_v38 = vsel %vm1451_vm2, %v3593_v35, %v1450_v50  ;;  %v3745_v62 = vadd.f32 %v3653_v51, %v3605_v57  ;;  %v3747_v10 = vpop.eup %2646 }
 0x175   : > { %v622_v9 = vmul.f32 %v558_v29, %v558_v29  ;;  %2656 = vlog2.f32 %v1606_v12  ;;  %v1454_v0 = vand.u32 2147483648, %v3593_v35  ;;  %v1229_v35 = vmul.f32 28.444445, %v3722_v18 }
 0x176   : > { %v3741_v16 = vadd.f32 %v621_v61, %v589_v17  ;;  %v3763_v57 = vsel %vm1446_vm1, %v1447_v28, %v1445_v33  ;;  %v560_v61 = vsub.f32 %v505_v43, %v3396_v56  ;;  %v623_v17 = vmul.f32 %v559_v44, %v559_v44 }
 0x177   : > { %v3751_v37 = vadd.f32 %v622_v9, %v590_v41  ;;  %5211 = vst [vmem:[#allocation46_spill] sm:$0xff] %v3763_v57  ;;  %2658 = vlog2.f32 %v1607_v15  ;;  %v3768_v12 = vsel %vm1453_vm3, %v1454_v0, %v1452_v38  ;;  %v1256_v29 = vmax.f32 %v3712_v25, 0.001  ;;  %v3774_v9 = vpop.permute.xlu1 %397  ;;  %v5301_v15 = vld [vmem:[#allocation31_spill] sm:$0xff] }
 0x178   : > { %v1230_v51 = vmul.f32 28.444445, %v3741_v16  ;;  %5212 = vst [vmem:[#allocation47_spill] sm:$0xff] %v3768_v12  ;;  %2660 = vrsqrt.f32 %v3639_v52  ;;  %v1257_v32 = vmax.f32 %v3719_v22, 0.001  ;;  %v5213_v43 = vmov 0.0  }
 0x179   : > { %v1231_v2 = vmul.f32 28.444445, %v3751_v37  ;;  %v2649_v41 = vpop.eup %2648  ;;  %v3779_v44 = vsel %vm3757_vm4, 1.0, %v5213_v43  ;;  %v1260_v25 = vmax.f32 %v3725_v24, 0.001  ;;  %v5073_v22 = vsub.f32 1.0, %v3763_v57 }
 0x17a   : > { %v1262_v33 = vmax.f32 %v1230_v51, 0.001  ;;  %v2651_v28 = vpop.eup %2650  ;;  %5214 = vst [vmem:[#allocation48_spill] sm:$0xff] %v3779_v44  ;;  %v751_v51 = vpop.permute.xlu0 %750  ;;  %v5072_v47 = vsub.f32 1.0, %v3768_v12  ;;  %v624_v21 = vmul.f32 %v560_v61, %v560_v61  ;;  %v3795_v18 = vadd.f32 %v623_v17, %v3598_v45 }
 0x17b   : > { %v1263_v38 = vmax.f32 %v1231_v2, 0.001  ;;  %v2653_v0 = vpop.eup %2652  ;;  %v1261_v20 = vmax.f32 %v1229_v35, 0.001  ;;  %vm779_vm7 = vcmp.eq.s32.totalorder %v745_v19, 1  ;;  %v3800_v24 = vmin.f32 %v1256_v29, 1.0 }
 0x17c   : > { %v3792_v48 = vmin.f32 %v1262_v33, 1.0  ;;  %5217 = vst [vmem:[#allocation49_spill] sm:$0xff] %v3795_v18  ;;  %v2655_v36 = vpop.eup %2654  ;;  %v3802_v2 = vmin.f32 %v1257_v32, 1.0  ;;  %v3813_v45 = vsel %vm3785_vm5, 1.0, %v5213_v43  ;;  %vm673_vm9 = vcmp.le.f32.partialorder %v3470_v27, 0.03515625 }
 0x17d   : > { %v3798_v44 = vmin.f32 %v1263_v38, 1.0  ;;  %5220 = vst [vmem:[#allocation50_spill] sm:$0xff] %v3813_v45  ;;  %v3816_v40 = vmin.f32 %v1260_v25, 1.0  ;;  %vm674_vm10 = vcmp.le.f32.partialorder %v3486_v39, 0.03515625  ;;  %vm781_vm11 = vcmp.eq.s32.totalorder %v751_v51, 1  ;;  %vm3822_vm13 = vmand %vm673_vm9, %vm779_vm7  ;;  %v3833_v39 = vpop.permute.xlu1 %512 }
 0x17e   : > { %v1578_v61 = vsub.f32 1.0, %v5073_v22  ;;  %v1579_v17 = vsub.f32 1.0, %v5072_v47  ;;  %2662 = vrsqrt.f32 %v3792_v48  ;;  %v3830_v27 = vadd.f32 %v624_v21, %v3600_v26  ;;  %vm3843_vm14 = vmand %vm674_vm10, %vm779_vm7 }
 0x17f   : > { %5221 = vst [vmem:[#allocation51_spill] sm:$0xff] %v3816_v40  ;;  %v1232_v35 = vmul.f32 28.444445, %v3795_v18  ;;  %v2657_v29 = vpop.eup %2656  ;;  %v3838_v32 = vsel %vm3806_vm8, 1.0, %v5213_v43  ;;  %v3840_v25 = vmin.f32 %v1261_v20, 1.0  ;;  %vm677_vm15 = vcmp.le.f32.partialorder %v3538_v58, 0.03515625 }
 0x180   : > { %5224 = vst [vmem:[#allocation52_spill] sm:$0xff] %v3830_v27  ;;  %5225 = vst [vmem:[#allocation53_spill] sm:$0xff] %v3838_v32  ;;  %2664 = vrsqrt.f32 %v3798_v44  ;;  %v1639_v26 = vmul.f32 0.6931472, %v2649_v41  ;;  %v1641_v21 = vmul.f32 0.6931472, %v2651_v28 }
 0x181   : > { %5226 = vst [vmem:[#allocation54_spill] sm:$0xff] %v3840_v25  ;;  %2666 = vrsqrt.f32 %v3800_v24  ;;  %vm678_vm0 = vcmp.le.f32.partialorder %v3544_v3, 0.03515625  ;;  %vm3852_vm1 = vmand %vm677_vm15, %vm781_vm11  ;;  %v5229_v47 = vmov 0  ;;  %v2659_v20 = vpop.eup %2658  ;;  %v1647_v19 = vmul.f32 0.6931472, %v2653_v0  ;;  %v727_v18 = vpop.permute.xlu1 %726 }
 0x182   : > { %v5230_v47 = vsel %vm3852_vm1, 4294967295, %v5229_v47  ;;  %2668 = vrsqrt.f32 %v3802_v2  ;;  %v1649_v22 = vmul.f32 0.6931472, %v2655_v36  ;;  %vm3858_vm2 = vmand %vm678_vm0, %vm781_vm11  ;;  %v1610_v12 = vmax.f32 %v1578_v61, 1e-20  ;;  %v3862_v41 = vpop.eup %2660 }
 0x183   : > { %2670 = vrsqrt.f32 %v3816_v40  ;;  %v1611_v3 = vmax.f32 %v1579_v17, 1e-20  ;;  %v1233_v28 = vmul.f32 28.444445, %v3830_v27  ;;  %v1264_v57 = vmax.f32 %v1232_v35, 0.001 }
 0x184   : > { %2672 = vrsqrt.f32 %v3840_v25  ;;  %v3870_v0 = vsel %vm3822_vm13, 1.0, %v5213_v43  ;;  %v3875_v51 = vsel %vm3843_vm14, 1.0, %v5213_v43  ;;  %v1655_v36 = vmul.f32 0.6931472, %v2657_v29 }
 0x185   : > { %5233 = vst [vmem:[#allocation55_spill] sm:$0xff] %v3870_v0  ;;  %5234 = vst [vmem:[#allocation56_spill] sm:$0xff] %v3875_v51  ;;  %v3878_v61 = vmul.f32 %v3813_v45, %v1639_v26  ;;  %v3883_v17 = vsel %vm3852_vm1, 1.0, %v5213_v43  ;;  %v3888_v35 = vsel %vm3858_vm2, 1.0, %v5213_v43  ;;  %v1657_v27 = vmul.f32 0.6931472, %v2659_v20 }
 0x186   : > { %5236 = vst [vmem:[#allocation58_spill] sm:$0xff] %v3883_v17  ;;  %5237 = vst [vmem:[#allocation59_spill] sm:$0xff] %v3888_v35  ;;  %v3891_v25 = vmul.f32 %v3838_v32, %v1641_v21  ;;  %v3894_v29 = vmul.f32 %v3870_v0, %v1647_v19  ;;  %2674 = vlog2.f32 %v1610_v12  ;;  %v3898_v26 = vadd.f32 %v3698_v7, %v3607_v63  ;;  %v733_v0 = vpop.permute.xlu1 %732 }
 0x187   : > { %5235 = vst [vmem:[#allocation57_spill] sm:$0xff] %v3878_v61  ;;  %v3901_v45 = vmul.f32 %v3875_v51, %v1649_v22  ;;  %2676 = vlog2.f32 %v1611_v3  ;;  %v1265_v61 = vmax.f32 %v1233_v28, 0.001  ;;  %v3903_v40 = vmin.f32 %v1264_v57, 1.0 }
 0x188   : > { %v3906_v20 = vmul.f32 %v3883_v17, %v1655_v36  ;;  %v1234_v21 = vmul.f32 28.444445, %v3745_v62  ;;  %vm661_vm3 = vcmp.le.f32.partialorder %v3419_v30, 0.03515625  ;;  %vm773_vm6 = vcmp.eq.s32.totalorder %v727_v18, 1  ;;  %v2663_v12 = vpop.eup %2662 }
 0x189   : > { %v3911_v19 = vmul.f32 %v3888_v35, %v1657_v27  ;;  %v1475_v7 = vand.u32 2147483648, %v3792_v48  ;;  %vm3917_vm10 = vmand %vm661_vm3, %vm773_vm6  ;;  %v1482_v22 = vand.u32 2147483648, %v3798_v44  ;;  %v1235_v30 = vmul.f32 28.444445, %v3898_v26 }
 0x18a   : > { %5238 = vst [vmem:[#allocation60_spill] sm:$0xff] %v3906_v20  ;;  %v2665_v57 = vpop.eup %2664  ;;  %v1331_v27 = vmul.f32 %v3622_v1, %v3504_v11  ;;  %vm1332_vm11 = vcmp.eq.f32.partialorder %v3504_v11, inf  ;;  %v3930_v28 = vmin.f32 %v1265_v61, 1.0  ;;  %2678 = vrsqrt.f32 %v3903_v40 }
 0x18b   : > { %5239 = vst [vmem:[#allocation61_spill] sm:$0xff] %v3911_v19  ;;  %v3926_v3 = vpop.eup %2666  ;;  %v449_v36 = vsub.f32 %v3774_v9, %v3390_v53  ;;  %v450_v35 = vsub.f32 %v3774_v9, %v3392_v54  ;;  %v1471_v1 = vmul.f32 %v2663_v12, %v3792_v48  ;;  %v1266_v51 = vmax.f32 %v1234_v21, 0.001 }
 0x18c   : > { %v3937_v17 = vpop.eup %2668  ;;  %v1333_v32 = vsel %vm1332_vm11, %v3504_v11, %v1331_v27  ;;  %vm1334_vm3 = vcmp.eq.f32.partialorder %v3504_v11, 0.0  ;;  %v1478_v53 = vmul.f32 %v2665_v57, %v3798_v44  ;;  %v1335_v54 = vand.u32 2147483648, %v3504_v11 }
 0x18d   : > { %v3946_v61 = vpop.eup %2670  ;;  %v1338_v9 = vmul.f32 %v3628_v14, %v3540_v59  ;;  %vm1339_vm15 = vcmp.eq.f32.partialorder %v3540_v59, inf  ;;  %v1267_v12 = vmax.f32 %v1235_v30, 0.001  ;;  %vm1341_vm11 = vcmp.eq.f32.partialorder %v3540_v59, 0.0 }
 0x18e   : > { %v3953_v21 = vpop.eup %2672  ;;  %v1342_v27 = vand.u32 2147483648, %v3540_v59  ;;  %vm662_vm0 = vcmp.le.f32.partialorder %v3422_v34, 0.03515625  ;;  %v563_v19 = vsub.f32 %v3833_v39, %v3394_v55  ;;  %v3960_v57 = vsel %vm1334_vm3, %v1335_v54, %v1333_v32 }
 0x18f   : > { %5242 = vst [vmem:[#allocation62_spill] sm:$0xff] %v3960_v57  ;;  %v1340_v11 = vsel %vm1339_vm15, %v3540_v59, %v1338_v9  ;;  %vm664_vm9 = vcmp.le.f32.partialorder %v3449_v4, 0.03515625  ;;  %vm3965_vm7 = vmand %vm662_vm0, %vm773_vm6  ;;  %2680 = vrsqrt.f32 %v3930_v28  ;;  %v3972_v20 = vmin.f32 %v1266_v51, 1.0 }
 0x190   : > { %v3969_v30 = vpop.eup %2674  ;;  %v3974_v34 = vsel %vm1341_vm11, %v1342_v27, %v1340_v11  ;;  %v5089_v55 = vsub.f32 1.0, %v3960_v57  ;;  %vm3979_vm15 = vmand %vm664_vm9, %vm774_vm12  ;;  %vm5250_vm6 = vcmp.eq.f32.partialorder %v3792_v48, inf  ;;  %vm5251_vm0 = vcmp.eq.f32.partialorder %v3798_v44, inf }
 0x191   : > { %5245 = vst [vmem:[#allocation63_spill] sm:$0xff] %v3969_v30  ;;  %5246 = vst [vmem:[#allocation64_spill] sm:$0xff] %v3974_v34  ;;  %v3983_v4 = vpop.eup %2676  ;;  %v1473_v18 = vsel %vm5250_vm6, %v3792_v48, %v1471_v1  ;;  %v1480_v32 = vsel %vm5251_vm0, %v3798_v44, %v1478_v53  ;;  %vm775_vm3 = vcmp.eq.s32.totalorder %v733_v0, 1  ;;  %v3996_v42 = vmin.f32 %v1267_v12, 1.0  ;;  %v736_v1 = vpop.permute.xlu1 %735  ;;  %v5264_v0 = vld [vmem:[#allocation28_spill] sm:$0xff] }
 0x192   : > { %5249 = vst [vmem:[#allocation65_spill] sm:$0xff] %v3983_v4  ;;  %vm2323_vm12 = vmpackc.low %vm3979_vm15, %vm3965_vm7  ;;  %v3998_v54 = vmul.f32 %v449_v36, %v449_v36  ;;  %v1562_v9 = vsub.f32 1.0, %v5089_v55  ;;  %v4002_v27 = vmul.f32 %v450_v35, %v450_v35  ;;  %v564_v53 = vsub.f32 %v3833_v39, %v3396_v56  ;;  %v5289_v35 = vld [vmem:[#allocation32_spill] sm:$0xff] }
 0x193   : > { %v4006_v11 = vmul.f32 %v563_v19, %v563_v19  ;;  %vm665_vm9 = vcmp.le.f32.partialorder %v3454_v13, 0.03515625  ;;  %v5090_v51 = vmov 1.0|1.0   ;;  %vm5252_vm11 = vcmp.eq.f32.partialorder %v3792_v48, 0.0 }
 0x194   : > { %2324 = vmatprep.subr.msk.bf16.mxu0 %vm2323_vm12, %v5090_v51  ;;  %v4012_v36 = vsel %vm5252_vm11, %v1475_v7, %v1473_v18  ;;  %vm5254_vm6 = vcmp.eq.f32.partialorder %v3798_v44, 0.0  ;;  %2682 = vrsqrt.f32 %v3972_v20  ;;  %vm666_vm0 = vcmp.le.f32.partialorder %v3474_v31, 0.03515625  ;;  %vm4021_vm1 = vmand %vm665_vm9, %vm775_vm3  ;;  %v4031_v13 = vpop.eup %2678 }
 0x195   : > { %5253 = vst [vmem:[#allocation66_spill] sm:$0xff] %v4012_v36  ;;  %v4016_v12 = vsel %vm5254_vm6, %v1482_v22, %v1480_v32  ;;  %vm5258_vm12 = vmpackc.low %vm3757_vm4, %vm3917_vm10  ;;  %v5261_v31 = vsub.f32 1.0, %v3974_v34  ;;  %v1594_v39 = vmax.f32 %v1562_v9, 1e-20  ;;  %vm667_vm9 = vcmp.le.f32.partialorder %v3402_v5, 0.03515625 }
 0x196   : > { %5255 = vst [vmem:[#allocation67_spill] sm:$0xff] %v4016_v12  ;;  %2326 = vmatpush1.bf16.msk.msra.mxu0 %vm5258_vm12, %v5090_v51  ;;  %vm4034_vm11 = vmand %vm666_vm0, %vm775_vm3  ;;  %vm776_vm6 = vcmp.eq.s32.totalorder %v736_v1, 1  ;;  %2684 = vrsqrt.f32 %v3996_v42  ;;  %vm668_vm4 = vcmp.le.f32.partialorder %v3404_v6, 0.03515625  ;;  %v1345_v19 = vmul.f32 %v5264_v0, %v3481_v46 }
 0x197   : > { %v1563_v44 = vsub.f32 1.0, %v5261_v31  ;;  %vm4044_vm12 = vmand %vm667_vm9, %vm776_vm6  ;;  %v4051_v22 = vmul.f32 %v564_v53, %v564_v53  ;;  %v4056_v5 = vsel %vm3917_vm10, 1.0, %v5213_v43  ;;  %vm1346_vm0 = vcmp.eq.f32.partialorder %v3481_v46, inf  ;;  %v5267_v53 = vld [vmem:[#allocation19_spill] sm:$0xff]  ;;  %v5268_v31 = vld [vmem:[#allocation29_spill] sm:$0xff] }
 0x198   : > { %vm4058_vm3 = vmand %vm668_vm4, %vm776_vm6  ;;  %v5092_v6 = vsub.f32 1.0, %v4012_v36  ;;  %v1347_v9 = vsel %vm1346_vm0, %v3481_v46, %v1345_v19  ;;  %v1349_v63 = vand.u32 2147483648, %v3481_v46  ;;  %2686 = vlog2.f32 %v1594_v39  ;;  %v5270_v39 = vld [vmem:[#allocation18_spill] sm:$0xff] }
 0x199   : > { %vm2327_vm9 = vmpackc.low %vm4058_vm3, %vm4034_vm11  ;;  %v1595_v1 = vmax.f32 %v1563_v44, 1e-20  ;;  %vm1348_vm6 = vcmp.eq.f32.partialorder %v3481_v46, 0.0  ;;  %v1352_v0 = vmul.f32 %v5268_v31, %v5267_v53  ;;  %v4079_v55 = vpop.eup %2680  ;;  %vm1353_vm4 = vcmp.eq.f32.partialorder %v5267_v53, inf  ;;  %v5271_v19 = vld [vmem:[#allocation26_spill] sm:$0xff] }
 0x19a   : > { %vm2329_vm10 = vmpackc.low %vm4044_vm12, %vm4021_vm1  ;;  %2328 = vmatprep.subr.msk.bf16.mxu0 %vm2327_vm9, %v5090_v51  ;;  %v4081_v7 = vsel %vm1348_vm6, %v1349_v63, %v1347_v9  ;;  %v1356_v44 = vand.u32 2147483648, %v5267_v53  ;;  %v1310_v50 = vmul.f32 %v5271_v19, %v5270_v39  ;;  %vm1355_vm0 = vcmp.eq.f32.partialorder %v5267_v53, 0.0 }
 0x19b   : > { %5269 = vst [vmem:[#allocation28_spill] sm:$0xff] %v4081_v7  ;;  %2330 = vmatpush1.bf16.msk.msra.mxu0 %vm2329_vm10, %v5090_v51  ;;  %v1354_v46 = vsel %vm1353_vm4, %v5267_v53, %v1352_v0  ;;  %v5096_v31 = vsub.f32 1.0, %v4081_v7  ;;  %vm1311_vm9 = vcmp.eq.f32.partialorder %v5270_v39, inf  ;;  %v1582_v9 = vsub.f32 1.0, %v5092_v6 }
 0x19c   : > { %v4097_v63 = vsel %vm4021_vm1, 1.0, %v5213_v43  ;;  %v4099_v32 = vsel %vm1355_vm0, %v1356_v44, %v1354_v46  ;;  %v1312_v19 = vsel %vm1311_vm9, %v5270_v39, %v1310_v50  ;;  %v4105_v53 = vsel %vm4034_vm11, 1.0, %v5213_v43  ;;  %v5276_v50 = vld [vmem:[#allocation22_spill] sm:$0xff]  ;;  %v5277_v44 = vld [vmem:[#allocation35_spill] sm:$0xff] }
 0x19d   : > { %5272 = vst [vmem:[#allocation19_spill] sm:$0xff] %v4097_v63  ;;  %5273 = vst [vmem:[#allocation29_spill] sm:$0xff] %v4099_v32  ;;  %v5099_v0 = vsub.f32 1.0, %v4099_v32  ;;  %v1564_v51 = vsub.f32 1.0, %v5096_v31  ;;  %v1314_v6 = vand.u32 2147483648, %v5270_v39  ;;  %v5275_v56 = vsub.f32 1.0, %v4016_v12 }
 0x19e   : > { %5274 = vst [vmem:[#allocation18_spill] sm:$0xff] %v4105_v53  ;;  %v2683_v36 = vpop.eup %2682  ;;  %2688 = vlog2.f32 %v1595_v1  ;;  %vm1313_vm1 = vcmp.eq.f32.partialorder %v5270_v39, 0.0  ;;  %v1324_v48 = vmul.f32 %v5277_v44, %v5276_v50  ;;  %vm1325_vm11 = vcmp.eq.f32.partialorder %v5276_v50, inf  ;;  %v5279_v44 = vld [vmem:[#allocation17_spill] sm:$0xff] }
 0x19f   : > { %v4113_v34 = vsub.f32 1.0, %v5275_v56  ;;  %v1565_v46 = vsub.f32 1.0, %v5099_v0  ;;  %v1596_v57 = vmax.f32 %v1564_v51, 1e-20  ;;  %v4120_v4 = vsel %vm1313_vm1, %v1314_v6, %v1312_v19  ;;  %v5280_v0 = vld [vmem:[#allocation25_spill] sm:$0xff] }
 0x1a0   : > { %5278 = vst [vmem:[#allocation26_spill] sm:$0xff] %v4120_v4  ;;  %v4123_v31 = vpop.eup %2684  ;;  %v1614_v7 = vmax.f32 %v1582_v9, 1e-20  ;;  %v1326_v56 = vsel %vm1325_vm11, %v5276_v50, %v1324_v48  ;;  %v1328_v1 = vand.u32 2147483648, %v5276_v50  ;;  %v5100_v39 = vsub.f32 1.0, %v4120_v4 }
 0x1a1   : > { %v1597_v12 = vmax.f32 %v1565_v46, 1e-20  ;;  %2690 = vlog2.f32 %v1596_v57  ;;  %vm1327_vm10 = vcmp.eq.f32.partialorder %v5276_v50, 0.0  ;;  %v1303_v51 = vmul.f32 %v5280_v0, %v5279_v44  ;;  %v5284_v57 = vld [vmem:[#allocation34_spill] sm:$0xff] }
 0x1a2   : > { %v4134_v6 = vsel %vm3965_vm7, 1.0, %v5213_v43  ;;  %v4136_v19 = vsel %vm1327_vm10, %v1328_v1, %v1326_v56  ;;  %v1559_v9 = vsub.f32 1.0, %v5100_v39  ;;  %vm1304_vm6 = vcmp.eq.f32.partialorder %v5279_v44, inf  ;;  %v2687_v48 = vpop.eup %2686 }
 0x1a3   : > { %5281 = vst [vmem:[#allocation22_spill] sm:$0xff] %v4134_v6  ;;  %5282 = vst [vmem:[#allocation35_spill] sm:$0xff] %v4136_v19  ;;  %v4143_v50 = vmul.f32 %v2683_v36, %v3972_v20  ;;  %v5102_v0 = vsub.f32 1.0, %v4136_v19  ;;  %v1305_v46 = vsel %vm1304_vm6, %v5279_v44, %v1303_v51  ;;  %2692 = vlog2.f32 %v1614_v7  ;;  %v5283_v36 = vld [vmem:[#allocation21_spill] sm:$0xff] }
 0x1a4   : > { %v4150_v14 = vsel %vm3979_vm15, 1.0, %v5213_v43  ;;  %v1591_v56 = vmax.f32 %v1559_v9, 1e-20  ;;  %v1307_v1 = vand.u32 2147483648, %v5279_v44  ;;  %2694 = vlog2.f32 %v1597_v12 }
 0x1a5   : > { %v1561_v39 = vsub.f32 1.0, %v5102_v0  ;;  %vm1306_vm7 = vcmp.eq.f32.partialorder %v5279_v44, 0.0  ;;  %v1317_v32 = vmul.f32 %v5284_v57, %v5283_v36  ;;  %vm1318_vm4 = vcmp.eq.f32.partialorder %v5283_v36, inf  ;;  %v742_v0 = vpop.permute.xlu1 %741 }
 0x1a6   : > { %2696 = vlog2.f32 %v1591_v56  ;;  %v4158_v51 = vsel %vm1306_vm7, %v1307_v1, %v1305_v46  ;;  %v1321_v59 = vand.u32 2147483648, %v5283_v36  ;;  %vm1320_vm15 = vcmp.eq.f32.partialorder %v5283_v36, 0.0  ;;  %v5287_v1 = vld [vmem:[#allocation20_spill] sm:$0xff] }
 0x1a7   : > { %5285 = vst [vmem:[#allocation17_spill] sm:$0xff] %v4158_v51  ;;  %v1593_v7 = vmax.f32 %v1561_v39, 1e-20  ;;  %v1319_v9 = vsel %vm1318_vm4, %v5283_v36, %v1317_v32  ;;  %v5105_v12 = vsub.f32 1.0, %v4158_v51  ;;  %v1631_v44 = vmul.f32 0.6931472, %v2687_v48 }
 0x1a8   : > { %v2689_v19 = vpop.eup %2688  ;;  %v4168_v57 = vsel %vm4044_vm12, 1.0, %v5213_v43  ;;  %v4173_v46 = vsel %vm4058_vm3, 1.0, %v5213_v43  ;;  %v4175_v39 = vsel %vm1320_vm15, %v1321_v59, %v1319_v9  ;;  %vm671_vm0 = vcmp.le.f32.partialorder %v5287_v1, 0.03515625  ;;  %v5288_v48 = vld [vmem:[#allocation23_spill] sm:$0xff]  ;;  %v5290_v36 = vld [vmem:[#allocation38_spill] sm:$0xff]  ;;  %v5293_v1 = vld [vmem:[#allocation33_spill] sm:$0xff] }
 0x1a9   : > { %5286 = vst [vmem:[#allocation25_spill] sm:$0xff] %v4175_v39  ;;  %2698 = vlog2.f32 %v1593_v7  ;;  %v5107_v32 = vsub.f32 1.0, %v4175_v39  ;;  %v1558_v56 = vsub.f32 1.0, %v5105_v12  ;;  %vm672_vm9 = vcmp.le.f32.partialorder %v5288_v48, 0.03515625  ;;  %v5294_v51 = vld [vmem:[#allocation40_spill] sm:$0xff] }
 0x1aa   : > { %vm778_vm1 = vcmp.eq.s32.totalorder %v742_v0, 1  ;;  %v1373_v4 = vmul.f32 %v5290_v36, %v5289_v35  ;;  %vm1374_vm12 = vcmp.eq.f32.partialorder %v5289_v35, inf  ;;  %v1377_v12 = vand.u32 2147483648, %v5289_v35 }
 0x1ab   : > { %v2691_v18 = vpop.eup %2690  ;;  %v1560_v59 = vsub.f32 1.0, %v5107_v32  ;;  %v1590_v7 = vmax.f32 %v1558_v56, 1e-20  ;;  %vm4187_vm3 = vmand %vm671_vm0, %vm778_vm1  ;;  %v1380_v48 = vmul.f32 %v5294_v51, %v5293_v1  ;;  %v1633_v0 = vmul.f32 0.6931472, %v2689_v19  ;;  %v748_v19 = vpop.permute.xlu1 %747 }
 0x1ac   : > { %v4195_v30 = vmul.f32 %v4097_v63, %v1631_v44  ;;  %vm4197_vm11 = vmand %vm672_vm9, %vm778_vm1  ;;  %v1375_v32 = vsel %vm1374_vm12, %v5289_v35, %v1373_v4  ;;  %vm1376_vm10 = vcmp.eq.f32.partialorder %v5289_v35, 0.0  ;;  %vm1381_vm7 = vcmp.eq.f32.partialorder %v5293_v1, inf }
 0x1ad   : > { %v1592_v56 = vmax.f32 %v1560_v59, 1e-20  ;;  %2700 = vlog2.f32 %v1590_v7  ;;  %vm2331_vm6 = vmpackc.low %vm4197_vm11, %vm3806_vm8  ;;  %v4207_v51 = vsel %vm1376_vm10, %v1377_v12, %v1375_v32  ;;  %v4210_v44 = vpop.eup %2692  ;;  %v4213_v63 = vmul.f32 %v4105_v53, %v1633_v0  ;;  %v5300_v0 = vld [vmem:[#allocation30_spill] sm:$0xff] }
 0x1ae   : > { %5297 = vst [vmem:[#allocation21_spill] sm:$0xff] %v4207_v51  ;;  %5298 = vst [vmem:[#allocation34_spill] sm:$0xff] %v4210_v44  ;;  %v1635_v4 = vmul.f32 0.6931472, %v2691_v18  ;;  %v4218_v35 = vsel %vm4187_vm3, 1.0, %v5213_v43  ;;  %v1382_v33 = vsel %vm1381_vm7, %v5293_v1, %v1380_v48  ;;  %v2695_v32 = vpop.eup %2694  ;;  %vm1383_vm4 = vcmp.eq.f32.partialorder %v5293_v1, 0.0  ;;  %v4234_v48 = vpop.permute.xlu0 %756 }
 0x1af   : > { %vm2333_vm8 = vmpackc.low %vm4187_vm3, %vm3785_vm5  ;;  %v5299_v12 = vmov 1.0|1.0   ;;  %2702 = vlog2.f32 %v1592_v56  ;;  %v1384_v18 = vand.u32 2147483648, %v5293_v1  ;;  %v5111_v59 = vsub.f32 1.0, %v4207_v51 }
 0x1b0   : > { %2332 = vmatprep.subr.msk.bf16.mxu0 %vm2331_vm6, %v5299_v12  ;;  %v2697_v7 = vpop.eup %2696  ;;  %vm675_vm15 = vcmp.le.f32.partialorder %v5300_v0, 0.03515625  ;;  %vm676_vm0 = vcmp.le.f32.partialorder %v5301_v15, 0.03515625  ;;  %vm780_vm5 = vcmp.eq.s32.totalorder %v748_v19, 1  ;;  %v1401_v9 = vmul.f32 %v3747_v10, %v3618_v8 }
 0x1b1   : > { %2334 = vmatpush1.bf16.msk.msra.mxu0 %vm2333_vm8, %v5299_v12  ;;  %v1625_v56 = vmul.f32 0.6931472, %v2697_v7  ;;  %v4236_v53 = vsel %vm1383_vm4, %v1384_v18, %v1382_v33  ;;  %v1568_v1 = vsub.f32 1.0, %v5111_v59  ;;  %vm4240_vm9 = vmand %vm675_vm15, %vm780_vm5  ;;  %vm1402_vm1 = vcmp.eq.f32.partialorder %v3618_v8, inf  ;;  %v5326_v33 = vld [vmem:[#allocation57_spill] sm:$0xff] }
 0x1b2   : > { %5302 = vst [vmem:[#allocation20_spill] sm:$0xff] %v4236_v53  ;;  %v1637_v0 = vmul.f32 0.6931472, %v2695_v32  ;;  %v4248_v19 = vsel %vm4197_vm11, 1.0, %v5213_v43  ;;  %v5113_v10 = vsub.f32 1.0, %v4236_v53  ;;  %vm4251_vm12 = vmand %vm676_vm0, %vm780_vm5  ;;  %v1403_v18 = vsel %vm1402_vm1, %v3618_v8, %v1401_v9 }
 0x1b3   : > { %v2699_v7 = vpop.eup %2698  ;;  %v1687_v15 = vmul.f32 %v4134_v6, %v1625_v56  ;;  %v1600_v59 = vmax.f32 %v1568_v1, 1e-20  ;;  %vm2335_vm3 = vmpackc.low %vm4251_vm12, %vm3843_vm14  ;;  %vm1404_vm11 = vcmp.eq.f32.partialorder %v3618_v8, 0.0  ;;  %v1405_v36 = vand.u32 2147483648, %v3618_v8 }
 0x1b4   : > { %vm783_vm10 = vcmp.eq.s32.totalorder %v4234_v48, 1  ;;  %v1629_v32 = vmul.f32 0.6931472, %v2699_v7  ;;  %v1569_v51 = vsub.f32 1.0, %v5113_v10  ;;  %vm2337_vm6 = vmpackc.low %vm4240_vm9, %vm3822_vm13  ;;  %v1408_v38 = vmul.f32 %v3862_v41, %v3639_v52  ;;  %2336 = vmatprep.subr.msk.bf16.mxu0 %vm2335_vm3, %v5299_v12  ;;  %v754_v10 = vpop.permute.xlu1 %753 }
 0x1b5   : > { %vm1409_vm14 = vcmp.eq.f32.partialorder %v3639_v52, inf  ;;  %2704 = vlog2.f32 %v1600_v59  ;;  %v4274_v8 = vsel %vm1404_vm11, %v1405_v36, %v1403_v18  ;;  %vm1411_vm7 = vcmp.eq.f32.partialorder %v3639_v52, 0.0  ;;  %2338 = vmatpush1.bf16.msk.msra.mxu0 %vm2337_vm6, %v5299_v12  ;;  %v5308_v59 = vld [vmem:[#allocation27_spill] sm:$0xff] }
 0x1b6   : > { %v1412_v9 = vand.u32 2147483648, %v3639_v52  ;;  %vm681_vm8 = vcmp.le.f32.partialorder %v5307_v23, 0.03515625  ;;  %v1689_v56 = vmul.f32 %v4150_v14, %v1629_v32  ;;  %v1601_v1 = vmax.f32 %v1569_v51, 1e-20 }
 0x1b7   : > { %v1410_v41 = vsel %vm1409_vm14, %v3639_v52, %v1408_v38  ;;  %v5128_v7 = vsub.f32 1.0, %v4274_v8  ;;  %v2701_v53 = vpop.eup %2700  ;;  %vm682_vm13 = vcmp.le.f32.partialorder %v5308_v59, 0.03515625  ;;  %v4285_v18 = vmul.f32 %v4168_v57, %v1635_v4  ;;  %v5321_v59 = vld [vmem:[#allocation45_spill] sm:$0xff] }
 0x1b8   : > { %v1693_v36 = vmul.f32 %v4173_v46, %v1637_v0  ;;  %v4288_v6 = vsel %vm1411_vm7, %v1412_v9, %v1410_v41  ;;  %vm679_vm4 = vcmp.le.f32.partialorder %v3669_v60, 0.03515625  ;;  %v2395_v44 = vpack.c.bf16 %v1689_v56, %v1687_v15  ;;  %v4297_v0 = vpop.permute.xlu0 %762  ;;  %v5313_v41 = vld [vmem:[#allocation48_spill] sm:$0xff] }
 0x1b9   : > { %v1623_v32 = vmul.f32 0.6931472, %v2701_v53  ;;  %2706 = vlog2.f32 %v1601_v1  ;;  %v5127_v52 = vsub.f32 1.0, %v4288_v6  ;;  %v2703_v51 = vpop.eup %2702  ;;  %v1572_v38 = vsub.f32 1.0, %v5128_v7 }
 0x1ba   : > { %vm680_vm15 = vcmp.le.f32.partialorder %v3701_v49, 0.03515625  ;;  %vm782_vm0 = vcmp.eq.s32.totalorder %v754_v10, 1  ;;  %v1429_v4 = vmul.f32 %v3926_v3, %v3800_v24  ;;  %2396 = vmatprep.subr.bf16.mxu1 %v2395_v44  ;;  %v1627_v9 = vmul.f32 0.6931472, %v2703_v51 }
 0x1bb   : > { %v1686_v15 = vmul.f32 %v4056_v5, %v1623_v32  ;;  %v1573_v53 = vsub.f32 1.0, %v5127_v52  ;;  %vm4304_vm5 = vmand %vm679_vm4, %vm782_vm0  ;;  %vm1430_vm1 = vcmp.eq.f32.partialorder %v3800_v24, inf  ;;  %vm685_vm3 = vcmp.le.f32.partialorder %v3741_v16, 0.03515625 }
 0x1bc   : > { %vm785_vm11 = vcmp.eq.s32.totalorder %v4297_v0, 1  ;;  %v4314_v3 = vsel %vm4240_vm9, 1.0, %v5213_v43  ;;  %v1604_v44 = vmax.f32 %v1572_v38, 1e-20  ;;  %v2399_v10 = vpack.c.bf16 %v1693_v36, %v4213_v63  ;;  %vm4319_vm6 = vmand %vm680_vm15, %vm782_vm0 }
 0x1bd   : > { %v1431_v1 = vsel %vm1430_vm1, %v3800_v24, %v1429_v4  ;;  %vm686_vm14 = vcmp.le.f32.partialorder %v3751_v37, 0.03515625  ;;  %v1688_v32 = vmul.f32 %v5313_v41, %v1627_v9  ;;  %v1605_v51 = vmax.f32 %v1573_v53, 1e-20  ;;  %vm2339_vm9 = vmpackc.low %vm4319_vm6, %vm3858_vm2  ;;  %v5317_v4 = vld [vmem:[#allocation44_spill] sm:$0xff]  ;;  %v5320_v53 = vld [vmem:[#allocation51_spill] sm:$0xff] }
 0x1be   : > { %v2401_v39 = vpack.c.bf16 %v4285_v18, %v4195_v30  ;;  %v1433_v49 = vand.u32 2147483648, %v3800_v24  ;;  %2708 = vlog2.f32 %v1604_v44  ;;  %vm5314_vm7 = vnez %v5230_v47  ;;  %v760_v30 = vpop.permute.xlu1 %759  ;;  %2340 = vmatprep.subr.msk.bf16.mxu0 %vm2339_vm9, %v5299_v12  ;;  %vm4350_vm2 = vmand %vm681_vm8, %vm783_vm10  ;;  %v4370_v44 = vpop.permute.xlu0 %768 }
 0x1bf   : > { %vm2341_vm4 = vmpackc.low %vm4304_vm5, %vm5314_vm7  ;;  %vm1432_vm15 = vcmp.eq.f32.partialorder %v3800_v24, 0.0  ;;  %v1436_v63 = vmul.f32 %v3937_v17, %v3802_v2  ;;  %vm1437_vm0 = vcmp.eq.f32.partialorder %v3802_v2, inf  ;;  %v2397_v58 = vpack.c.bf16 %v1688_v32, %v1686_v15  ;;  %v2705_v47 = vpop.eup %2704 }
 0x1c0   : > { %2710 = vlog2.f32 %v1605_v51  ;;  %v4342_v18 = vsel %vm1432_vm15, %v1433_v49, %v1431_v1  ;;  %v1440_v36 = vand.u32 2147483648, %v3802_v2  ;;  %2342 = vmatpush1.bf16.msk.msra.mxu0 %vm2341_vm4, %v5299_v12  ;;  %vm1439_vm1 = vcmp.eq.f32.partialorder %v3802_v2, 0.0  ;;  %vm4362_vm7 = vmand %vm682_vm13, %vm783_vm10 }
 0x1c1   : > { %v1438_v17 = vsel %vm1437_vm0, %v3802_v2, %v1436_v63  ;;  %v5126_v38 = vsub.f32 1.0, %v4342_v18  ;;  %vm683_vm9 = vcmp.le.f32.partialorder %v5317_v4, 0.03515625  ;;  %2398 = vmatpush1.bf16.msra.mxu1 %v2397_v58  ;;  %v1643_v23 = vmul.f32 0.6931472, %v2705_v47 }
 0x1c2   : > { %v4366_v15 = vsel %vm1439_vm1, %v1440_v36, %v1438_v17  ;;  %vm784_vm8 = vcmp.eq.s32.totalorder %v760_v30, 1  ;;  %v1457_v2 = vmul.f32 %v3946_v61, %v5320_v53  ;;  %2400 = vmatprep.subr.bf16.mxu1 %v2399_v10  ;;  %vm684_vm10 = vcmp.le.f32.partialorder %v5321_v59, 0.03515625 }
 0x1c3   : > { %v5125_v1 = vsub.f32 1.0, %v4366_v15  ;;  %v1576_v48 = vsub.f32 1.0, %v5126_v38  ;;  %vm4376_vm13 = vmand %vm683_vm9, %vm784_vm8  ;;  %vm1458_vm4 = vcmp.eq.f32.partialorder %v5320_v53, inf  ;;  %v2707_v51 = vpop.eup %2706  ;;  %v1696_v49 = vmul.f32 %v4218_v35, %v1643_v23  ;;  %v5328_v23 = vld [vmem:[#allocation54_spill] sm:$0xff] }
 0x1c4   : > { %v4385_v61 = vsel %vm4251_vm12, 1.0, %v5213_v43  ;;  %vm4387_vm15 = vmand %vm684_vm10, %vm784_vm8  ;;  %v1459_v63 = vsel %vm1458_vm4, %v5320_v53, %v1457_v2  ;;  %v1461_v30 = vand.u32 2147483648, %v5320_v53  ;;  %v1645_v58 = vmul.f32 0.6931472, %v2707_v51 }
 0x1c5   : > { %v1577_v36 = vsub.f32 1.0, %v5125_v1  ;;  %v1608_v47 = vmax.f32 %v1576_v48, 1e-20  ;;  %vm2343_vm0 = vmpackc.low %vm4387_vm15, %vm4362_vm7  ;;  %vm1460_vm12 = vcmp.eq.f32.partialorder %v5320_v53, 0.0  ;;  %vm787_vm1 = vcmp.eq.s32.totalorder %v4370_v44, 1  ;;  %2402 = vmatpush1.bf16.msra.mxu1 %v2401_v39  ;;  %v766_v48 = vpop.permute.xlu1 %765 }
 0x1c6   : > { %v2405_v17 = vpack.c.bf16 %v1696_v49, %v5326_v33  ;;  %vm2345_vm9 = vmpackc.low %vm4376_vm13, %vm4350_vm2  ;;  %v4406_v4 = vsel %vm1460_vm12, %v1461_v30, %v1459_v63  ;;  %v1464_v2 = vmul.f32 %v3953_v21, %v5328_v23  ;;  %vm1465_vm8 = vcmp.eq.f32.partialorder %v5328_v23, inf  ;;  %2344 = vmatprep.subr.msk.bf16.mxu0 %vm2343_vm0, %v5299_v12  ;;  %v5331_v63 = vld [vmem:[#allocation49_spill] sm:$0xff] }
 0x1c7   : > { %5327 = vst [vmem:[#allocation23_spill] sm:$0xff] %v4406_v4  ;;  %v1697_v53 = vmul.f32 %v4248_v19, %v1645_v58  ;;  %v1609_v39 = vmax.f32 %v1577_v36, 1e-20  ;;  %2712 = vlog2.f32 %v1608_v47  ;;  %vm1467_vm10 = vcmp.eq.f32.partialorder %v5328_v23, 0.0  ;;  %2346 = vmatpush1.bf16.msk.msra.mxu0 %vm2345_vm9, %v5299_v12  ;;  %vm4419_vm4 = vmand %vm685_vm3, %vm785_vm11  ;;  %v5334_v36 = vld [vmem:[#allocation52_spill] sm:$0xff] }
 0x1c8   : > { %v1466_v21 = vsel %vm1465_vm8, %v5328_v23, %v1464_v2  ;;  %v1468_v51 = vand.u32 2147483648, %v5328_v23  ;;  %v5124_v49 = vsub.f32 1.0, %v4406_v4  ;;  %vm687_vm0 = vcmp.le.f32.partialorder %v5331_v63, 0.03515625  ;;  %v2709_v30 = vpop.eup %2708  ;;  %vm4432_vm9 = vmand %vm686_vm14, %vm785_vm11 }
 0x1c9   : > { %vm690_vm3 = vcmp.le.f32.partialorder %v3898_v26, 0.03515625  ;;  %2714 = vlog2.f32 %v1609_v39  ;;  %v2403_v58 = vpack.c.bf16 %v1697_v53, %v3891_v25  ;;  %vm688_vm8 = vcmp.le.f32.partialorder %v5334_v36, 0.03515625  ;;  %v772_v36 = vpop.permute.xlu1 %771 }
 0x1ca   : > { %vm786_vm12 = vcmp.eq.s32.totalorder %v766_v48, 1  ;;  %v2711_v47 = vpop.eup %2710  ;;  %v1651_v33 = vmul.f32 0.6931472, %v2709_v30  ;;  %v4441_v2 = vsel %vm1467_vm10, %v1468_v51, %v1466_v21  ;;  %v1580_v37 = vsub.f32 1.0, %v5124_v49 }
 0x1cb   : > { %5335 = vst [vmem:[#allocation32_spill] sm:$0xff] %v4441_v2  ;;  %vm4445_vm11 = vmand %vm687_vm0, %vm786_vm12  ;;  %v1485_v39 = vmul.f32 %v4031_v13, %v3903_v40  ;;  %v4453_v25 = vmul.f32 %v4123_v31, %v3996_v42  ;;  %v1653_v48 = vmul.f32 0.6931472, %v2711_v47  ;;  %2404 = vmatprep.subr.bf16.mxu1 %v2403_v58  ;;  %v5123_v23 = vsub.f32 1.0, %v4441_v2 }
 0x1cc   : > { %vm4456_vm14 = vmand %vm688_vm8, %vm786_vm12  ;;  %v5338_v53 = vmov 0  ;;  %vm1486_vm10 = vcmp.eq.f32.partialorder %v3903_v40, inf  ;;  %v1700_v21 = vmul.f32 %v4314_v3, %v1651_v33  ;;  %v4466_v13 = vsel %vm4304_vm5, 1.0, %v5213_v43  ;;  %2406 = vmatpush1.bf16.msra.mxu1 %v2405_v17 }
 0x1cd   : > { %v5339_v53 = vsel %vm4456_vm14, 4294967295, %v5338_v53  ;;  %v1612_v31 = vmax.f32 %v1580_v37, 1e-20  ;;  %vm2347_vm12 = vmpackc.low %vm4456_vm14, %vm4432_vm9  ;;  %v1487_v51 = vsel %vm1486_vm10, %v3903_v40, %v1485_v39  ;;  %v1701_v63 = vmul.f32 %v4385_v61, %v1653_v48 }
 0x1ce   : > { %v4478_v30 = vsel %vm4319_vm6, 1.0, %v5213_v43  ;;  %v1581_v56 = vsub.f32 1.0, %v5123_v23  ;;  %vm2349_vm5 = vmpackc.low %vm4445_vm11, %vm4419_vm4  ;;  %v1489_v17 = vand.u32 2147483648, %v3903_v40  ;;  %2348 = vmatprep.subr.msk.bf16.mxu0 %vm2347_vm12, %v5299_v12  ;;  %v2409_v58 = vpack.c.bf16 %v1700_v21, %v3894_v29 }
 0x1cf   : > { %2716 = vlog2.f32 %v1612_v31  ;;  %vm1488_vm10 = vcmp.eq.f32.partialorder %v3903_v40, 0.0  ;;  %v1492_v60 = vmul.f32 %v4079_v55, %v3930_v28  ;;  %2350 = vmatpush1.bf16.msk.msra.mxu0 %vm2349_vm5, %v5299_v12  ;;  %v2407_v33 = vpack.c.bf16 %v1701_v63, %v3901_v45  ;;  %vm4518_vm8 = vmand %vm690_vm3, %vm787_vm1 }
 0x1d0   : > { %v1613_v47 = vmax.f32 %v1581_v56, 1e-20  ;;  %v4495_v37 = vsel %vm1488_vm10, %v1489_v17, %v1487_v51  ;;  %vm1493_vm12 = vcmp.eq.f32.partialorder %v3930_v28, inf  ;;  %v1496_v29 = vand.u32 2147483648, %v3930_v28 }
 0x1d1   : > { %5340 = vst [vmem:[#allocation38_spill] sm:$0xff] %v4495_v37  ;;  %v1494_v39 = vsel %vm1493_vm12, %v3930_v28, %v1492_v60  ;;  %v5120_v40 = vsub.f32 1.0, %v4495_v37  ;;  %v659_v55 = vadd.f32 %v4006_v11, %v3998_v54  ;;  %v2713_v48 = vpop.eup %2712  ;;  %vm5341_vm5 = vcmp.le.f32.partialorder %v3745_v62, 0.03515625  ;;  %2408 = vmatprep.subr.bf16.mxu1 %v2407_v33 }
 0x1d2   : > { %vm4507_vm6 = vmand %vm5341_vm5, %vm787_vm1  ;;  %2718 = vlog2.f32 %v1613_v47  ;;  %vm1495_vm10 = vcmp.eq.f32.partialorder %v3930_v28, 0.0  ;;  %v660_v21 = vadd.f32 %v4051_v22, %v4002_v27  ;;  %vm788_vm12 = vcmp.eq.s32.totalorder %v772_v36, 1  ;;  %2410 = vmatpush1.bf16.msra.mxu1 %v2409_v58  ;;  %v4526_v28 = vld [vmem:[#allocation5] sm:$0xff]  }
 0x1d3   : > { %v1659_v62 = vmul.f32 0.6931472, %v2713_v48  ;;  %v4522_v11 = vsel %vm1495_vm10, %v1496_v29, %v1494_v39  ;;  %v1584_v31 = vsub.f32 1.0, %v5120_v40  ;;  %vm691_vm5 = vcmp.le.f32.partialorder %v659_v55, 0.03515625  ;;  %v2715_v27 = vpop.eup %2714 }
 0x1d4   : > { %5346 = vst [vmem:[#allocation33_spill] sm:$0xff] %v4522_v11  ;;  %v5117_v22 = vsub.f32 1.0, %v4522_v11  ;;  %vm692_vm0 = vcmp.le.f32.partialorder %v660_v21, 0.03515625  ;;  %vm4530_vm14 = vmand %vm691_vm5, %vm788_vm12  ;;  %v1236_v44 = vmul.f32 28.444445, %v659_v55  ;;  %vm5352_vm3 = vcmp.eq.f32.partialorder %v3972_v20, inf }
 0x1d5   : > { %v1237_v51 = vmul.f32 28.444445, %v660_v21  ;;  %v5349_v63 = vmax.f32 %v4113_v34, 1e-20  ;;  %v1661_v56 = vmul.f32 0.6931472, %v2715_v27  ;;  %v1704_v17 = vmul.f32 %v4466_v13, %v1659_v62  ;;  %vm4538_vm1 = vmand %vm692_vm0, %vm788_vm12 }
 0x1d6   : > { %v1616_v58 = vmax.f32 %v1584_v31, 1e-20  ;;  %v1501_v47 = vsel %vm5352_vm3, %v3972_v20, %v4143_v50  ;;  %v1585_v33 = vsub.f32 1.0, %v5117_v22  ;;  %vm2351_vm10 = vmpackc.low %vm4538_vm1, %vm4518_vm8  ;;  %v1268_v34 = vmax.f32 %v1236_v44, 0.001  ;;  %v5354_v55 = vld [vmem:[#allocation60_spill] sm:$0xff] }
 0x1d7   : > { %2720 = vlog2.f32 %v5349_v63  ;;  %v1269_v39 = vmax.f32 %v1237_v51, 0.001  ;;  %vm5353_vm0 = vcmp.eq.f32.partialorder %v3996_v42, inf  ;;  %v1705_v29 = vmul.f32 %v4478_v30, %v1661_v56  ;;  %vm2353_vm12 = vmpackc.low %vm4530_vm14, %vm4507_vm6  ;;  %2352 = vmatprep.subr.msk.bf16.mxu0 %vm2351_vm10, %v5299_v12  ;;  %v5358_v51 = vld [vmem:[#allocation61_spill] sm:$0xff]  ;;  %v5359_v56 = vld [vmem:[#allocation63_spill] sm:$0xff] }
 0x1d8   : > { %v1508_v36 = vsel %vm5353_vm0, %v3996_v42, %v4453_v25  ;;  %2722 = vlog2.f32 %v1616_v58  ;;  %v1617_v50 = vmax.f32 %v1585_v33, 1e-20  ;;  %v2413_v48 = vpack.c.bf16 %v1704_v17, %v5354_v55  ;;  %2354 = vmatpush1.bf16.msk.msra.mxu0 %vm2353_vm12, %v5299_v12 }
 0x1d9   : > { %v4563_v21 = vmin.f32 %v1268_v34, 1.0  ;;  %v4565_v62 = vmin.f32 %v1269_v39, 1.0  ;;  %v2717_v25 = vpop.eup %2716  ;;  %v5355_v31 = vand.u32 2147483648, %v3972_v20  ;;  %vm5356_vm5 = vcmp.eq.f32.partialorder %v3972_v20, 0.0  ;;  %v5362_v20 = vld [vmem:[#allocation65_spill] sm:$0xff] }
 0x1da   : > { %vm1509_vm3 = vcmp.eq.f32.partialorder %v3996_v42, 0.0  ;;  %v4578_v44 = vsel %vm4376_vm13, 1.0, %v5213_v43  ;;  %v2411_v63 = vpack.c.bf16 %v1705_v29, %v5358_v51  ;;  %v1663_v17 = vmul.f32 0.6931472, %v5359_v56  ;;  %v4598_v29 = vld [vmem:[#allocation5 + $0x8] sm:$0xff]  }
 0x1db   : > { %v4572_v27 = vsel %vm5356_vm5, %v5355_v31, %v1501_v47  ;;  %v5360_v12 = vand.u32 2147483648, %v3996_v42  ;;  %v1667_v33 = vmul.f32 0.6931472, %v2717_v25  ;;  %2724 = vlog2.f32 %v1617_v50  ;;  %998 = vmatmul.mubr.bf16.vlgmr.msra.gmra.mrb[0].mxu0 %v4526_v28 }
 0x1dc   : > { %5357 = vst [vmem:[#allocation40_spill] sm:$0xff] %v4572_v27  ;;  %v1665_v47 = vmul.f32 0.6931472, %v5362_v20  ;;  %2412 = vmatprep.subr.bf16.mxu1 %v2411_v63  ;;  %2726 = vrsqrt.f32 %v4563_v21  ;;  %v2719_v32 = vpop.eup %2718  ;;  %v5119_v34 = vsub.f32 1.0, %v4572_v27  ;;  %v4593_v39 = vsel %vm4387_vm15, 1.0, %v5213_v43 }
 0x1dd   : > { %v4584_v58 = vsel %vm1509_vm3, %v5360_v12, %v1508_v36  ;;  %5363 = vst [vmem:[#allocation31_spill] sm:$0xff] %v4593_v39  ;;  %v1708_v42 = vmul.f32 %v4578_v44, %v1667_v33  ;;  %2414 = vmatpush1.bf16.msra.mxu1 %v2413_v48  ;;  %2728 = vrsqrt.f32 %v4565_v62  ;;  %v5364_v36 = vmov 0   ;;  %v5365_v33 = vld [vmem:[#allocation34_spill] sm:$0xff] }
 0x1de   : > { %5361 = vst [vmem:[#allocation30_spill] sm:$0xff] %v4584_v58  ;;  %1007 = vmatprep.mubr.bf16.mxu0 %v5364_v36  ;;  %v4603_v50 = vsel %vm4350_vm2, 1.0, %v5213_v43  ;;  %v5118_v55 = vsub.f32 1.0, %v4584_v58  ;;  %v1669_v25 = vmul.f32 0.6931472, %v2719_v32  ;;  %v4609_v10 = vsel %vm4362_vm7, 1.0, %v5213_v43 }
 0x1df   : > { %v1706_v48 = vmul.f32 %v4603_v50, %v1663_v17  ;;  %v1707_v51 = vmul.f32 %v4609_v10, %v1665_v47  ;;  %v1586_v24 = vsub.f32 1.0, %v5119_v34  ;;  %v1671_v20 = vmul.f32 0.6931472, %v5365_v33 }
 0x1e0   : > { %v1709_v63 = vmul.f32 %v4593_v39, %v1669_v25  ;;  %v1587_v32 = vsub.f32 1.0, %v5118_v55  ;;  %v4622_v9 = vsel %vm4445_vm11, 1.0, %v5213_v43  ;;  %v4625_v25 = vld [vmem:[#allocation5 + $0x10] sm:$0xff]   ;;  %v4635_v0 = vsel %vm4432_vm9, 1.0, %v5213_v43 }
 0x1e1   : > { %v2721_v31 = vpop.eup %2720  ;;  %v2417_v56 = vpack.c.bf16 %v1708_v42, %v1706_v48  ;;  %5366 = vst [vmem:[#allocation24_spill] sm:$0xff] %v4622_v9  ;;  %v4630_v48 = vsel %vm4419_vm4, 1.0, %v5213_v43  ;;  %5368 = vst [vmem:[#allocation48_spill] sm:$0xff] %v4635_v0  ;;  %vm5369_vm2 = vnez %v5339_v53  ;;  %vm1514_vm7 = vcmp.eq.f32.partialorder %v4563_v21, inf }
 0x1e2   : > { %v2723_v12 = vpop.eup %2722  ;;  %v2415_v17 = vpack.c.bf16 %v1709_v63, %v1707_v51  ;;  %v1673_v22 = vmul.f32 0.6931472, %v2721_v31  ;;  %5367 = vst [vmem:[#allocation27_spill] sm:$0xff] %v4630_v48  ;;  %v4640_v31 = vsel %vm5369_vm2, 1.0, %v5213_v43  ;;  %v1710_v59 = vmul.f32 %v4630_v48, %v1671_v20  ;;  %v5384_v48 = vld [vmem:[#allocation26_spill] sm:$0xff] }
 0x1e3   : > { %v1675_v47 = vmul.f32 0.6931472, %v2723_v12  ;;  %1008 = vmatmul.mubr.bf16.gmra.mrb[4].mxu0 %v4598_v29  ;;  %5370 = vst [vmem:[#allocation44_spill] sm:$0xff] %v4640_v31  ;;  %v1618_v12 = vmax.f32 %v1586_v24, 1e-20  ;;  %vm1516_vm13 = vcmp.eq.f32.partialorder %v4563_v21, 0.0  ;;  %v1718_v54 = vunpack.c.l.bf16 %v4526_v28 }
 0x1e4   : > { %2416 = vmatprep.subr.bf16.mxu1 %v2415_v17  ;;  %1017 = vmatprep.mubr.bf16.mxu0 %v5364_v36  ;;  %v1619_v33 = vmax.f32 %v1587_v32, 1e-20  ;;  %v1711_v16 = vmul.f32 %v4635_v0, %v1673_v22  ;;  %vm1521_vm15 = vcmp.eq.f32.partialorder %v4565_v62, inf  ;;  %v1524_v24 = vand.u32 2147483648, %v4565_v62  ;;  %v5383_v0 = vld [vmem:[#allocation22_spill] sm:$0xff] }
 0x1e5   : > { %v2725_v42 = vpop.eup %2724  ;;  %v1712_v51 = vmul.f32 %v4622_v9, %v1675_v47  ;;  %2418 = vmatpush1.bf16.msra.mxu1 %v2417_v56  ;;  %v1517_v56 = vand.u32 2147483648, %v4563_v21  ;;  %vm1523_vm4 = vcmp.eq.f32.partialorder %v4565_v62, 0.0  ;;  %2730 = vlog2.f32 %v1618_v12  ;;  %v893_v12 = vld [vmem:[#allocation5 + $0x20] sm:$0xff]  }
 0x1e6   : > { %v2727_v63 = vpop.eup %2726  ;;  %v1677_v17 = vmul.f32 0.6931472, %v2725_v42  ;;  %2732 = vlog2.f32 %v1619_v33  ;;  %v4676_v33 = vsel %vm4507_vm6, 1.0, %v5213_v43  ;;  %v4693_v45 = vsel %vm4538_vm1, 1.0, %v5213_v43 }
 0x1e7   : > { %v2729_v55 = vpop.eup %2728  ;;  %v1513_v34 = vmul.f32 %v2727_v63, %v4563_v21  ;;  %v2421_v32 = vpack.c.bf16 %v1712_v51, %v1710_v59  ;;  %5373 = vst [vmem:[#allocation57_spill] sm:$0xff] %v4676_v33  ;;  %5376 = vst [vmem:[#allocation52_spill] sm:$0xff] %v4693_v45  ;;  %v1719_v60 = vunpack.c.h.bf16 %v4526_v28  ;;  %v1723_v28 = vunpack.c.h.bf16 %v4625_v25 }
 0x1e8   : > { %v1713_v53 = vmul.f32 %v4640_v31, %v1677_v17  ;;  %v1520_v47 = vmul.f32 %v2729_v55, %v4565_v62  ;;  %v5380_v31 = vld [vmem:[#allocation17_spill] sm:$0xff] }
 0x1e9   : > { %v1515_v20 = vsel %vm1514_vm7, %v4563_v21, %v1513_v34  ;;  %v4667_v34 = vld [vmem:[#allocation5 + $0x18] sm:$0xff]   ;;  %v5381_v37 = vsub.f32 1.0, %v5380_v31 }
 0x1ea   : > { %v4655_v22 = vsel %vm1516_vm13, %v1517_v56, %v1515_v20  ;;  %v1522_v42 = vsel %vm1521_vm15, %v4565_v62, %v1520_v47  ;;  %v2419_v63 = vpack.c.bf16 %v1713_v53, %v1711_v16 }
 0x1eb   : > { %5371 = vst [vmem:[#allocation51_spill] sm:$0xff] %v4655_v22  ;;  %v4659_v17 = vsel %vm1523_vm4, %v1524_v24, %v1522_v42  ;;  %v5122_v40 = vsub.f32 1.0, %v4655_v22  ;;  %1018 = vmatmul.mubr.bf16.gmra.mrb[8].mxu0 %v4625_v25  ;;  %v4681_v42 = vsel %vm4530_vm14, 1.0, %v5213_v43 }
 0x1ec   : > { %5372 = vst [vmem:[#allocation45_spill] sm:$0xff] %v4659_v17  ;;  %v5121_v55 = vsub.f32 1.0, %v4659_v17  ;;  %2420 = vmatprep.subr.bf16.mxu1 %v2419_v63  ;;  %1027 = vmatprep.mubr.bf16.mxu0 %v5364_v36  ;;  %5374 = vst [vmem:[#allocation54_spill] sm:$0xff] %v4681_v42 }
 0x1ed   : > { %v1588_v21 = vsub.f32 1.0, %v5122_v40  ;;  %2422 = vmatpush1.bf16.msra.mxu1 %v2421_v32 }
 0x1ee   : > { %v1589_v62 = vsub.f32 1.0, %v5121_v55 }
 0x1ef   : > { %v1620_v51 = vmax.f32 %v1588_v21, 1e-20  ;;  %v2731_v16 = vpop.eup %2730  ;;  %v895_v21 = vld [vmem:[#allocation5 + $0x28] sm:$0xff]  }
 0x1f0   : > { %v1621_v59 = vmax.f32 %v1589_v62, 1e-20  ;;  %v2733_v53 = vpop.eup %2732  ;;  %v1679_v56 = vmul.f32 0.6931472, %v2731_v16  ;;  %v4687_v62 = vsel %vm4518_vm8, 1.0, %v5213_v43 }
 0x1f1   : > { %2734 = vlog2.f32 %v1620_v51  ;;  %v1681_v20 = vmul.f32 0.6931472, %v2733_v53  ;;  %5375 = vst [vmem:[#allocation49_spill] sm:$0xff] %v4687_v62 }
 0x1f2   : > { %2736 = vlog2.f32 %v1621_v59  ;;  %v1714_v51 = vmul.f32 %v4676_v33, %v1679_v56  ;;  %v897_v56 = vld [vmem:[#allocation5 + $0x30] sm:$0xff]  }
 0x1f3   : > { %1028 = vmatmul.mubr.bf16.gmra.mrb[12].mxu0 %v4667_v34  ;;  %v1715_v59 = vmul.f32 %v4687_v62, %v1681_v20  ;;  %v1720_v20 = vunpack.c.l.bf16 %v4598_v29 }
 0x1f4   : > { %1037 = vmatprep.mubr.bf16.mxu0 %v5364_v36 }
 0x1fb   : > { %v2735_v47 = vpop.eup %2734  ;;  %1038 = vmatmul.mubr.bf16.gmra.mrb[16].mxu0 %v893_v12 }
 0x1fc   : > { %v2737_v24 = vpop.eup %2736  ;;  %v1683_v32 = vmul.f32 0.6931472, %v2735_v47  ;;  %1047 = vmatprep.mubr.bf16.mxu0 %v5364_v36 }
 0x1fd   : > { %v1685_v63 = vmul.f32 0.6931472, %v2737_v24  ;;  %v899_v24 = vld [vmem:[#allocation5 + $0x38] sm:$0xff]  }
 0x1fe   : > { %v1716_v26 = vmul.f32 %v4681_v42, %v1683_v32  ;;  %v1721_v32 = vunpack.c.h.bf16 %v4598_v29  ;;  %v1725_v29 = vunpack.c.h.bf16 %v4667_v34 }
 0x1ff   : > { %v1717_v16 = vmul.f32 %v4693_v45, %v1685_v63  ;;  %v1722_v63 = vunpack.c.l.bf16 %v4625_v25  ;;  %v1728_v25 = vunpack.c.l.bf16 %v895_v21 }
 0x200   : > { %v2425_v53 = vpack.c.bf16 %v1716_v26, %v1714_v51  ;;  %v1726_v51 = vunpack.c.l.bf16 %v893_v12  ;;  %v1727_v26 = vunpack.c.h.bf16 %v893_v12  ;;  %v1732_v12 = vunpack.c.l.bf16 %v899_v24 }
 0x201   : > { %v2423_v47 = vpack.c.bf16 %v1717_v16, %v1715_v59  ;;  %v1729_v59 = vunpack.c.h.bf16 %v895_v21  ;;  %v1731_v16 = vunpack.c.h.bf16 %v897_v56 }
 0x203   : > { %2424 = vmatprep.subr.bf16.mxu1 %v2423_v47  ;;  %1048 = vmatmul.mubr.bf16.gmra.mrb[20].mxu0 %v895_v21 }
 0x204   : > { %2426 = vmatpush1.bf16.msra.mxu1 %v2425_v53  ;;  %1057 = vmatprep.mubr.bf16.mxu0 %v5364_v36  ;;  %v1733_v53 = vunpack.c.h.bf16 %v899_v24 }
 0x207   : > { %1799 = vmatmul.mubr.f32.vlgmr.msra.gmra.mrb[0].mxu1 %v1718_v54 }
 0x208   : > { %1804 = vmatprep.mubr.f32.mxu1 %v5213_v43 }
 0x20b   : > { %1805 = vmatmul.mubr.f32.gmra.mrb[2].mxu1 %v1719_v60  ;;  %1058 = vmatmul.mubr.bf16.gmra.mrb[24].mxu0 %v897_v56 }
 0x20c   : > { %1810 = vmatprep.mubr.f32.mxu1 %v5213_v43  ;;  %1067 = vmatprep.mubr.bf16.mxu0 %v5364_v36  ;;  %v1724_v36 = vunpack.c.l.bf16 %v4667_v34  ;;  %v1730_v34 = vunpack.c.l.bf16 %v897_v56 }
 0x20f   : > { %1811 = vmatmul.mubr.f32.gmra.mrb[4].mxu1 %v1720_v20 }
 0x210   : > { %1816 = vmatprep.mubr.f32.mxu1 %v5213_v43 }
 0x213   : > { %1817 = vmatmul.mubr.f32.gmra.mrb[6].mxu1 %v1721_v32  ;;  %1068 = vmatmul.mubr.bf16.gmra.mrb[28].mxu0 %v899_v24 }
 0x214   : > { %1822 = vmatprep.mubr.f32.mxu1 %v5213_v43  ;;  %2091 = vmatprep.mubr.f32.mxu0 %v5213_v43 }
 0x217   : > { %1823 = vmatmul.mubr.f32.gmra.mrb[8].mxu1 %v1722_v63 }
 0x218   : > { %1828 = vmatprep.mubr.f32.mxu1 %v5213_v43 }
 0x21b   : > { %1829 = vmatmul.mubr.f32.gmra.mrb[10].mxu1 %v1723_v28 }
 0x21c   : > { %1834 = vmatprep.mubr.f32.mxu1 %v5213_v43 }
 0x21f   : > { %1835 = vmatmul.mubr.f32.gmra.mrb[12].mxu1 %v1724_v36 }
 0x220   : > { %1840 = vmatprep.mubr.f32.mxu1 %v5213_v43 }
 0x223   : > { %1841 = vmatmul.mubr.f32.gmra.mrb[14].mxu1 %v1725_v29 }
 0x224   : > { %1846 = vmatprep.mubr.f32.mxu1 %v5213_v43 }
 0x227   : > { %1847 = vmatmul.mubr.f32.gmra.mrb[16].mxu1 %v1726_v51 }
 0x228   : > { %1852 = vmatprep.mubr.f32.mxu1 %v5213_v43 }
 0x22b   : > { %1853 = vmatmul.mubr.f32.gmra.mrb[18].mxu1 %v1727_v26 }
 0x22c   : > { %1858 = vmatprep.mubr.f32.mxu1 %v5213_v43 }
 0x22f   : > { %1859 = vmatmul.mubr.f32.gmra.mrb[20].mxu1 %v1728_v25 }
 0x230   : > { %1864 = vmatprep.mubr.f32.mxu1 %v5213_v43 }
 0x233   : > { %1865 = vmatmul.mubr.f32.gmra.mrb[22].mxu1 %v1729_v59 }
 0x234   : > { %1870 = vmatprep.mubr.f32.mxu1 %v5213_v43 }
 0x237   : > { %1871 = vmatmul.mubr.f32.gmra.mrb[24].mxu1 %v1730_v34 }
 0x238   : > { %1876 = vmatprep.mubr.f32.mxu1 %v5213_v43 }
 0x23b   : > { %1877 = vmatmul.mubr.f32.gmra.mrb[26].mxu1 %v1731_v16 }
 0x23c   : > { %1882 = vmatprep.mubr.f32.mxu1 %v5213_v43 }
 0x23f   : > { %1883 = vmatmul.mubr.f32.gmra.mrb[28].mxu1 %v1732_v12 }
 0x240   : > { %1888 = vmatprep.mubr.f32.mxu1 %v5213_v43 }
 0x243   : > { %1889 = vmatmul.mubr.f32.gmra.mrb[30].mxu1 %v1733_v53 }
 0x244   : > { %2103 = vmatprep.mubr.f32.mxu1 %v5213_v43 }
 0x2ae   : > { %v999_v21 = vpop.f32.mrb[0].mxu0 }
 0x2af   : > { %v1001_v47 = vpop.f32.mrb[1].mxu0  ;;  %vm1078_vm9 = vcmp.lt.f32.partialorder %v999_v21, 8.0 }
 0x2b0   : > { %v4725_v54 = vpop.f32.mrb[2].mxu0  ;;  %vm1079_vm11 = vcmp.lt.f32.partialorder %v1001_v47, 8.0 }
 0x2b1   : > { %v4727_v60 = vpop.f32.mrb[3].mxu0  ;;  %vm1080_vm14 = vcmp.lt.f32.partialorder %v4725_v54, 8.0 }
 0x2b2   : > { %vm1081_vm8 = vcmp.lt.f32.partialorder %v4727_v60, 8.0 }
 0x2b6   : > { %v4729_v56 = vpop.f32.mrb[4].mxu0 }
 0x2b7   : > { %v4731_v20 = vpop.f32.mrb[5].mxu0  ;;  %vm1082_vm6 = vcmp.lt.f32.partialorder %v4729_v56, 8.0 }
 0x2b8   : > { %v4733_v32 = vpop.f32.mrb[6].mxu0  ;;  %vm1083_vm1 = vcmp.lt.f32.partialorder %v4731_v20, 8.0  ;;  %v5393_v20 = vld [vmem:[#allocation18_spill] sm:$0xff] }
 0x2b9   : > { %v4735_v63 = vpop.f32.mrb[7].mxu0  ;;  %vm1084_vm10 = vcmp.lt.f32.partialorder %v4733_v32, 8.0 }
 0x2ba   : > { %vm1085_vm0 = vcmp.lt.f32.partialorder %v4735_v63, 8.0  ;;  %v2361_v32 = vsel %vm1084_vm10, 1.0, %v5213_v43 }
 0x2be   : > { %v4737_v24 = vpop.f32.mrb[8].mxu0 }
 0x2bf   : > { %v4739_v28 = vpop.f32.mrb[9].mxu0  ;;  %vm1086_vm12 = vcmp.lt.f32.partialorder %v4737_v24, 8.0  ;;  %v2362_v24 = vsel %vm1085_vm0, 1.0, %v5213_v43 }
 0x2c0   : > { %v4741_v36 = vpop.f32.mrb[10].mxu0  ;;  %vm1087_vm5 = vcmp.lt.f32.partialorder %v4739_v28, 8.0 }
 0x2c1   : > { %v4743_v29 = vpop.f32.mrb[11].mxu0  ;;  %vm1088_vm3 = vcmp.lt.f32.partialorder %v4741_v36, 8.0 }
 0x2c2   : > { %vm1089_vm2 = vcmp.lt.f32.partialorder %v4743_v29, 8.0  ;;  %v2365_v36 = vsel %vm1088_vm3, 1.0, %v5213_v43 }
 0x2c6   : > { %v4745_v51 = vpop.f32.mrb[12].mxu0 }
 0x2c7   : > { %v4747_v26 = vpop.f32.mrb[13].mxu0  ;;  %vm1090_vm7 = vcmp.lt.f32.partialorder %v4745_v51, 8.0  ;;  %v2366_v51 = vsel %vm1089_vm2, 1.0, %v5213_v43 }
 0x2c8   : > { %v4749_v25 = vpop.f32.mrb[14].mxu0  ;;  %vm1091_vm13 = vcmp.lt.f32.partialorder %v4747_v26, 8.0 }
 0x2c9   : > { %v4751_v59 = vpop.f32.mrb[15].mxu0  ;;  %vm1092_vm15 = vcmp.lt.f32.partialorder %v4749_v25, 8.0 }
 0x2ca   : > { %vm1093_vm4 = vcmp.lt.f32.partialorder %v4751_v59, 8.0  ;;  %v2369_v25 = vsel %vm1092_vm15, 1.0, %v5213_v43 }
 0x2ce   : > { %v4753_v34 = vpop.f32.mrb[16].mxu0 }
 0x2cf   : > { %v4755_v16 = vpop.f32.mrb[17].mxu0 }
 0x2d0   : > { %v4757_v12 = vpop.f32.mrb[18].mxu0 }
 0x2d1   : > { %v4759_v53 = vpop.f32.mrb[19].mxu0 }
 0x2d6   : > { %v4761_v55 = vpop.f32.mrb[20].mxu0 }
 0x2d7   : > { %v4763_v40 = vpop.f32.mrb[21].mxu0 }
 0x2d8   : > { %v4765_v23 = vpop.f32.mrb[22].mxu0 }
 0x2d9   : > { %v4767_v1 = vpop.f32.mrb[23].mxu0  ;;  %vm1100_vm10 = vcmp.lt.f32.partialorder %v4765_v23, 8.0 }
 0x2da   : > { %v1800_v49 = vpop.f32.mrb[0].mxu1  ;;  %vm1101_vm0 = vcmp.lt.f32.partialorder %v4767_v1, 8.0  ;;  %v2377_v23 = vsel %vm1100_vm10, 1.0, %v5213_v43 }
 0x2db   : > { %v1895_v38 = vmul.f32 1.442695, %v1800_v49  ;;  %v1802_v52 = vpop.f32.mrb[1].mxu1  ;;  %v2355_v49 = vsel %vm1078_vm9, 1.0, %v5213_v43  ;;  %vm1094_vm9 = vcmp.lt.f32.partialorder %v4753_v34, 8.0  ;;  %v2378_v1 = vsel %vm1101_vm0, 1.0, %v5213_v43 }
 0x2dc   : > { %v1897_v7 = vmul.f32 1.442695, %v1802_v52 }
 0x2dd   : > { %2738 = vpow2.f32 %v1895_v38 }
 0x2de   : > { %2740 = vpow2.f32 %v1897_v7  ;;  %v1806_v17 = vpop.f32.mrb[2].mxu1  ;;  %v4769_v42 = vpop.f32.mrb[24].mxu0 }
 0x2df   : > { %v1899_v45 = vmul.f32 1.442695, %v1806_v17  ;;  %v1808_v22 = vpop.f32.mrb[3].mxu1  ;;  %v4771_v62 = vpop.f32.mrb[25].mxu0  ;;  %v2356_v17 = vsel %vm1079_vm11, 1.0, %v5213_v43  ;;  %vm1095_vm11 = vcmp.lt.f32.partialorder %v4755_v16, 8.0 }
 0x2e0   : > { %v1901_v58 = vmul.f32 1.442695, %v1808_v22  ;;  %v4773_v27 = vpop.f32.mrb[26].mxu0  ;;  %v2371_v16 = vsel %vm1094_vm9, 1.0, %v5213_v43 }
 0x2e1   : > { %2742 = vpow2.f32 %v1899_v45  ;;  %5377 = vst [vmem:[#allocation60_spill] sm:$0xff] %v4773_v27  ;;  %v4775_v11 = vpop.f32.mrb[27].mxu0 }
 0x2e2   : > { %2744 = vpow2.f32 %v1901_v58  ;;  %v1812_v33 = vpop.f32.mrb[4].mxu1  ;;  %5378 = vst [vmem:[#allocation61_spill] sm:$0xff] %v4775_v11  ;;  %v1175_v11 = vmul.f32 %v2356_v17, %v5383_v0 }
 0x2e3   : > { %v1903_v52 = vmul.f32 1.442695, %v1812_v33  ;;  %v1814_v38 = vpop.f32.mrb[5].mxu1 }
 0x2e4   : > { %v1905_v7 = vmul.f32 1.442695, %v1814_v38  ;;  %v1174_v38 = vmul.f32 %v2355_v49, %v4056_v5  ;;  %v2358_v5 = vsel %vm1081_vm8, 1.0, %v5213_v43  ;;  %vm1097_vm8 = vcmp.lt.f32.partialorder %v4759_v53, 8.0 }
 0x2e5   : > { %2746 = vpow2.f32 %v1903_v52  ;;  %v2374_v53 = vsel %vm1097_vm8, 1.0, %v5213_v43 }
 0x2e6   : > { %2748 = vpow2.f32 %v1905_v7  ;;  %v1818_v22 = vpop.f32.mrb[6].mxu1  ;;  %v4782_v47 = vpop.f32.mrb[28].mxu0 }
 0x2e7   : > { %v2739_v45 = vpop.eup %2738  ;;  %v1907_v58 = vmul.f32 1.442695, %v1818_v22  ;;  %v1820_v21 = vpop.f32.mrb[7].mxu1  ;;  %5379 = vst [vmem:[#allocation63_spill] sm:$0xff] %v4782_v47  ;;  %v2357_v22 = vsel %vm1080_vm14, 1.0, %v5213_v43  ;;  %v5385_v47 = vsub.f32 1.0, %v5384_v48 }
 0x2e8   : > { %v2741_v33 = vpop.eup %2740  ;;  %v1909_v52 = vmul.f32 1.442695, %v1820_v21  ;;  %v1959_v9 = vmul.f32 %v2739_v45, %v5381_v37  ;;  %v4788_v7 = vpop.f32.mrb[29].mxu0  ;;  %v2359_v37 = vsel %vm1082_vm6, 1.0, %v5213_v43  ;;  %v2360_v48 = vsel %vm1083_vm1, 1.0, %v5213_v43 }
 0x2e9   : > { %5382 = vst [vmem:[#allocation65_spill] sm:$0xff] %v4788_v7  ;;  %2750 = vpow2.f32 %v1907_v58  ;;  %v1960_v27 = vmul.f32 %v2741_v33, %v5385_v47  ;;  %v4796_v2 = vpop.f32.mrb[30].mxu0  ;;  %v1176_v60 = vmul.f32 %v2357_v22, %v5313_v41  ;;  %v5388_v33 = vld [vmem:[#allocation25_spill] sm:$0xff]  ;;  %v1179_v4 = vmul.f32 %v2360_v48, %v5393_v20  ;;  %v5398_v20 = vld [vmem:[#allocation28_spill] sm:$0xff] }
 0x2ea   : > { %5386 = vst [vmem:[#allocation34_spill] sm:$0xff] %v4796_v2  ;;  %2752 = vpow2.f32 %v1909_v52  ;;  %v1824_v0 = vpop.f32.mrb[8].mxu1  ;;  %v1991_v31 = vmul.f32 %v1959_v9, %v1174_v38  ;;  %v4804_v49 = vpop.f32.mrb[31].mxu0  ;;  %v5389_v56 = vsub.f32 1.0, %v5388_v33  ;;  %v1177_v52 = vmul.f32 %v2358_v5, %v4150_v14  ;;  %v5390_v9 = vld [vmem:[#allocation19_spill] sm:$0xff] }
 0x2eb   : > { %5387 = vst [vmem:[#allocation17_spill] sm:$0xff] %v4804_v49  ;;  %v2743_v54 = vpop.eup %2742  ;;  %v1911_v17 = vmul.f32 1.442695, %v1824_v0  ;;  %v1826_v45 = vpop.f32.mrb[9].mxu1  ;;  %v1992_v58 = vmul.f32 %v1960_v27, %v1175_v11  ;;  %v1178_v38 = vmul.f32 %v2359_v37, %v5390_v9  ;;  %v5391_v49 = vld [vmem:[#allocation35_spill] sm:$0xff]  ;;  %vm1096_vm14 = vcmp.lt.f32.partialorder %v4757_v12, 8.0 }
 0x2ec   : > { %v2745_v21 = vpop.eup %2744  ;;  %v1913_v47 = vmul.f32 1.442695, %v1826_v45  ;;  %v1961_v2 = vmul.f32 %v2743_v54, %v5389_v56  ;;  %v5392_v7 = vsub.f32 1.0, %v5391_v49  ;;  %v5394_v49 = vld [vmem:[#allocation62_spill] sm:$0xff]  ;;  %vm1098_vm6 = vcmp.lt.f32.partialorder %v4761_v55, 8.0 }
 0x2ed   : > { %2754 = vpow2.f32 %v1911_v17  ;;  %v5395_v54 = vsub.f32 1.0, %v5394_v49  ;;  %v5396_v17 = vld [vmem:[#allocation64_spill] sm:$0xff]  ;;  %vm1099_vm1 = vcmp.lt.f32.partialorder %v4763_v40, 8.0  ;;  %v2375_v55 = vsel %vm1098_vm6, 1.0, %v5213_v43 }
 0x2ee   : > { %v1962_v39 = vmul.f32 %v2745_v21, %v5392_v7  ;;  %2756 = vpow2.f32 %v1913_v47  ;;  %v1830_v11 = vpop.f32.mrb[10].mxu1  ;;  %v1993_v27 = vmul.f32 %v1961_v2, %v1176_v60  ;;  %v5397_v45 = vsub.f32 1.0, %v5396_v17 }
 0x2ef   : > { %v2747_v41 = vpop.eup %2746  ;;  %v1915_v22 = vmul.f32 1.442695, %v1830_v11  ;;  %v1832_v14 = vpop.f32.mrb[11].mxu1  ;;  %v2363_v21 = vsel %vm1086_vm12, 1.0, %v5213_v43  ;;  %v5399_v11 = vsub.f32 1.0, %v5398_v20  ;;  %vm1102_vm12 = vcmp.lt.f32.partialorder %v4769_v42, 8.0 }
 0x2f0   : > { %v1994_v5 = vmul.f32 %v1962_v39, %v1177_v52  ;;  %v2749_v37 = vpop.eup %2748  ;;  %v1917_v0 = vmul.f32 1.442695, %v1832_v14  ;;  %v2429_v7 = vpack.c.bf16 %v1993_v27, %v1991_v31  ;;  %v1963_v48 = vmul.f32 %v2747_v41, %v5395_v54  ;;  %v5401_v14 = vld [vmem:[#allocation29_spill] sm:$0xff] }
 0x2f1   : > { %2758 = vpow2.f32 %v1915_v22  ;;  %v1964_v63 = vmul.f32 %v2749_v37, %v5397_v45  ;;  %v2364_v31 = vsel %vm1087_vm5, 1.0, %v5213_v43  ;;  %v1181_v41 = vmul.f32 %v2362_v24, %v4173_v46  ;;  %v5404_v45 = vld [vmem:[#allocation36_spill] sm:$0xff] }
 0x2f2   : > { %v2427_v2 = vpack.c.bf16 %v1994_v5, %v1992_v58  ;;  %2760 = vpow2.f32 %v1917_v0  ;;  %v1836_v39 = vpop.f32.mrb[12].mxu1  ;;  %v1995_v60 = vmul.f32 %v1963_v48, %v1178_v38  ;;  %v1180_v58 = vmul.f32 %v2361_v32, %v4168_v57  ;;  %v5400_v38 = vld [vmem:[#allocation50_spill] sm:$0xff]  ;;  %v5403_v0 = vld [vmem:[#allocation53_spill] sm:$0xff] }
 0x2f3   : > { %v2751_v28 = vpop.eup %2750  ;;  %v1919_v47 = vmul.f32 1.442695, %v1836_v39  ;;  %v1838_v33 = vpop.f32.mrb[13].mxu1  ;;  %v1996_v56 = vmul.f32 %v1964_v63, %v1179_v4  ;;  %v1182_v22 = vmul.f32 %v2363_v21, %v5400_v38  ;;  %v5402_v5 = vsub.f32 1.0, %v5401_v14  ;;  %v5406_v39 = vld [vmem:[#allocation37_spill] sm:$0xff] }
 0x2f4   : > { %2428 = vmatprep.subr.bf16.mxu0 %v2427_v2  ;;  %2459 = vmatprep.subr.bf16.mxu1 %v2427_v2  ;;  %v2753_v52 = vpop.eup %2752  ;;  %v1921_v9 = vmul.f32 1.442695, %v1838_v33  ;;  %v1965_v27 = vmul.f32 %v2751_v28, %v5399_v11  ;;  %v1183_v49 = vmul.f32 %v2364_v31, %v5403_v0  ;;  %v5405_v63 = vsub.f32 1.0, %v5404_v45  ;;  %v5414_v45 = vld [vmem:[#allocation39_spill] sm:$0xff] }
 0x2f5   : > { %2430 = vmatpush1.bf16.msra.mxu0 %v2429_v7  ;;  %2467 = vmatpush1.bf16.msra.mxu1 %v2429_v7  ;;  %2762 = vpow2.f32 %v1919_v47  ;;  %v1966_v37 = vmul.f32 %v2753_v52, %v5402_v5  ;;  %v5407_v28 = vsub.f32 1.0, %v5406_v39  ;;  %v2367_v31 = vsel %vm1090_vm7, 1.0, %v5213_v43 }
 0x2f6   : > { %2764 = vpow2.f32 %v1921_v9  ;;  %v1842_v57 = vpop.f32.mrb[14].mxu1  ;;  %v1997_v4 = vmul.f32 %v1965_v27, %v1180_v58  ;;  %v5408_v27 = vld [vmem:[#allocation21_spill] sm:$0xff]  ;;  %v1185_v14 = vmul.f32 %v2366_v51, %v4248_v19  ;;  %vm1103_vm5 = vcmp.lt.f32.partialorder %v4771_v62, 8.0  ;;  %v5440_v62 = vld [vmem:[#allocation48_spill] sm:$0xff] }
 0x2f7   : > { %v2755_v54 = vpop.eup %2754  ;;  %v1923_v7 = vmul.f32 1.442695, %v1842_v57  ;;  %v1844_v46 = vpop.f32.mrb[15].mxu1  ;;  %v1998_v48 = vmul.f32 %v1966_v37, %v1181_v41  ;;  %v5409_v41 = vsub.f32 1.0, %v5408_v27  ;;  %v5411_v37 = vld [vmem:[#allocation20_spill] sm:$0xff] }
 0x2f8   : > { %v2757_v32 = vpop.eup %2756  ;;  %v1925_v2 = vmul.f32 1.442695, %v1844_v46  ;;  %v2433_v17 = vpack.c.bf16 %v1997_v4, %v1995_v60  ;;  %v1967_v24 = vmul.f32 %v2755_v54, %v5405_v63  ;;  %v2368_v60 = vsel %vm1091_vm13, 1.0, %v5213_v43  ;;  %v5413_v4 = vld [vmem:[#allocation56_spill] sm:$0xff] }
 0x2f9   : > { %2766 = vpow2.f32 %v1923_v7  ;;  %v2431_v21 = vpack.c.bf16 %v1998_v48, %v1996_v56  ;;  %v1968_v29 = vmul.f32 %v2757_v32, %v5407_v28  ;;  %v1184_v56 = vmul.f32 %v2365_v36, %v4218_v35 }
 0x2fa   : > { %2768 = vpow2.f32 %v1925_v2  ;;  %v1848_v47 = vpop.f32.mrb[16].mxu1  ;;  %v1999_v33 = vmul.f32 %v1967_v24, %v1182_v22  ;;  %v5410_v22 = vld [vmem:[#allocation55_spill] sm:$0xff]  ;;  %v5412_v0 = vsub.f32 1.0, %v5411_v37  ;;  %v1187_v54 = vmul.f32 %v2368_v60, %v5413_v4 }
 0x2fb   : > { %v2759_v26 = vpop.eup %2758  ;;  %v1927_v52 = vmul.f32 1.442695, %v1848_v47  ;;  %v1850_v58 = vpop.f32.mrb[17].mxu1  ;;  %2432 = vmatprep.subr.bf16.mxu0 %v2431_v21  ;;  %2460 = vmatprep.subr.bf16.mxu1 %v2431_v21  ;;  %v2000_v9 = vmul.f32 %v1968_v29, %v1183_v49  ;;  %v1186_v5 = vmul.f32 %v2367_v31, %v5410_v22  ;;  %v5415_v63 = vsub.f32 1.0, %v5414_v45  ;;  %v5416_v21 = vld [vmem:[#allocation41_spill] sm:$0xff] }
 0x2fc   : > { %v2761_v20 = vpop.eup %2760  ;;  %v1929_v11 = vmul.f32 1.442695, %v1850_v58  ;;  %2434 = vmatpush1.bf16.msra.mxu0 %v2433_v17  ;;  %2468 = vmatpush1.bf16.msra.mxu1 %v2433_v17  ;;  %v1969_v38 = vmul.f32 %v2759_v26, %v5409_v41  ;;  %v5417_v39 = vsub.f32 1.0, %v5416_v21  ;;  %v2370_v28 = vsel %vm1093_vm4, 1.0, %v5213_v43  ;;  %v5420_v41 = vld [vmem:[#allocation58_spill] sm:$0xff] }
 0x2fd   : > { %2770 = vpow2.f32 %v1927_v52  ;;  %v1970_v57 = vmul.f32 %v2761_v20, %v5412_v0  ;;  %v2372_v47 = vsel %vm1095_vm11, 1.0, %v5213_v43  ;;  %v1188_v58 = vmul.f32 %v2369_v25, %v4314_v3 }
 0x2fe   : > { %2772 = vpow2.f32 %v1929_v11  ;;  %v1854_v35 = vpop.f32.mrb[18].mxu1  ;;  %v2001_v49 = vmul.f32 %v1969_v38, %v1184_v56  ;;  %v5418_v20 = vsub.f32 1.0, %v4274_v8  ;;  %v1189_v34 = vmul.f32 %v2370_v28, %v4385_v61 }
 0x2ff   : > { %v2763_v7 = vpop.eup %2762  ;;  %v1931_v46 = vmul.f32 1.442695, %v1854_v35  ;;  %v1856_v19 = vpop.f32.mrb[19].mxu1  ;;  %v2002_v48 = vmul.f32 %v1970_v57, %v1185_v14  ;;  %v5419_v11 = vsub.f32 1.0, %v4288_v6  ;;  %v1190_v38 = vmul.f32 %v2371_v16, %v5420_v41  ;;  %v5421_v14 = vld [vmem:[#allocation59_spill] sm:$0xff] }
 0x300   : > { %v2765_v32 = vpop.eup %2764  ;;  %v1933_v2 = vmul.f32 1.442695, %v1856_v19  ;;  %v2437_v17 = vpack.c.bf16 %v2001_v49, %v1999_v33  ;;  %v1971_v24 = vmul.f32 %v2763_v7, %v5415_v63  ;;  %v1191_v22 = vmul.f32 %v2372_v47, %v5421_v14 }
 0x301   : > { %2774 = vpow2.f32 %v1931_v46  ;;  %v2435_v36 = vpack.c.bf16 %v2002_v48, %v2000_v9  ;;  %v1972_v59 = vmul.f32 %v2765_v32, %v5417_v39  ;;  %v2373_v37 = vsel %vm1096_vm14, 1.0, %v5213_v43  ;;  %v5424_v46 = vld [vmem:[#allocation43_spill] sm:$0xff] }
 0x302   : > { %2776 = vpow2.f32 %v1933_v2  ;;  %v1860_v29 = vpop.f32.mrb[20].mxu1  ;;  %v2003_v51 = vmul.f32 %v1971_v24, %v1186_v5  ;;  %v5425_v19 = vsub.f32 1.0, %v5424_v46  ;;  %v2376_v21 = vsel %vm1099_vm1, 1.0, %v5213_v43 }
 0x303   : > { %v2767_v31 = vpop.eup %2766  ;;  %v1935_v33 = vmul.f32 1.442695, %v1860_v29  ;;  %v1862_v26 = vpop.f32.mrb[21].mxu1  ;;  %2436 = vmatprep.subr.bf16.mxu0 %v2435_v36  ;;  %2461 = vmatprep.subr.bf16.mxu1 %v2435_v36  ;;  %v2004_v60 = vmul.f32 %v1972_v59, %v1187_v54  ;;  %v5422_v54 = vld [vmem:[#allocation42_spill] sm:$0xff]  ;;  %v1192_v36 = vmul.f32 %v2373_v37, %v4466_v13  ;;  %v5426_v59 = vsub.f32 1.0, %v4342_v18 }
 0x304   : > { %v2769_v52 = vpop.eup %2768  ;;  %v1937_v9 = vmul.f32 1.442695, %v1862_v26  ;;  %2438 = vmatpush1.bf16.msra.mxu0 %v2437_v17  ;;  %2469 = vmatpush1.bf16.msra.mxu1 %v2437_v17  ;;  %v1973_v56 = vmul.f32 %v2767_v31, %v5418_v20  ;;  %v5423_v35 = vsub.f32 1.0, %v5422_v54  ;;  %v1193_v29 = vmul.f32 %v2374_v53, %v4478_v30  ;;  %v5435_v54 = vld [vmem:[#allocation32_spill] sm:$0xff]  ;;  %v5439_v53 = vld [vmem:[#allocation61_spill] sm:$0xff] }
 0x305   : > { %2778 = vpow2.f32 %v1935_v33  ;;  %v1974_v27 = vmul.f32 %v2769_v52, %v5419_v11  ;;  %v1194_v13 = vmul.f32 %v2375_v55, %v4603_v50  ;;  %v1195_v33 = vmul.f32 %v2376_v21, %v4609_v10 }
 0x306   : > { %2780 = vpow2.f32 %v1937_v9  ;;  %v1866_v3 = vpop.f32.mrb[22].mxu1  ;;  %v2005_v5 = vmul.f32 %v1973_v56, %v1188_v58  ;;  %v5430_v56 = vld [vmem:[#allocation47_spill] sm:$0xff]  ;;  %vm1105_vm2 = vcmp.lt.f32.partialorder %v5439_v53, 8.0 }
 0x307   : > { %v2771_v12 = vpop.eup %2770  ;;  %v1939_v8 = vmul.f32 1.442695, %v1866_v3  ;;  %v1868_v0 = vpop.f32.mrb[23].mxu1  ;;  %v2006_v57 = vmul.f32 %v1974_v27, %v1189_v34  ;;  %v5431_v34 = vsub.f32 1.0, %v5430_v56 }
 0x308   : > { %v2773_v61 = vpop.eup %2772  ;;  %v1941_v6 = vmul.f32 1.442695, %v1868_v0  ;;  %v2441_v4 = vpack.c.bf16 %v2005_v5, %v2003_v51  ;;  %v1975_v49 = vmul.f32 %v2771_v12, %v5423_v35  ;;  %v5427_v51 = vsub.f32 1.0, %v4366_v15  ;;  %v5428_v15 = vld [vmem:[#allocation46_spill] sm:$0xff] }
 0x309   : > { %2782 = vpow2.f32 %v1939_v8  ;;  %v2439_v7 = vpack.c.bf16 %v2006_v57, %v2004_v60  ;;  %v1976_v48 = vmul.f32 %v2773_v61, %v5425_v19  ;;  %v5429_v9 = vsub.f32 1.0, %v5428_v15  ;;  %v5432_v8 = vld [vmem:[#allocation23_spill] sm:$0xff] }
 0x30a   : > { %2784 = vpow2.f32 %v1941_v6  ;;  %v1872_v32 = vpop.f32.mrb[24].mxu1  ;;  %v2007_v2 = vmul.f32 %v1975_v49, %v1190_v38  ;;  %v1196_v5 = vmul.f32 %v2377_v23, %v4578_v44  ;;  %v2379_v12 = vsel %vm1102_vm12, 1.0, %v5213_v43  ;;  %v5434_v61 = vld [vmem:[#allocation31_spill] sm:$0xff]  ;;  %v5437_v49 = vld [vmem:[#allocation60_spill] sm:$0xff] }
 0x30b   : > { %v2775_v17 = vpop.eup %2774  ;;  %v1943_v45 = vmul.f32 1.442695, %v1872_v32  ;;  %v1874_v63 = vpop.f32.mrb[25].mxu1  ;;  %2440 = vmatprep.subr.bf16.mxu0 %v2439_v7  ;;  %2462 = vmatprep.subr.bf16.mxu1 %v2439_v7  ;;  %v2008_v24 = vmul.f32 %v1976_v48, %v1191_v22  ;;  %v5433_v0 = vsub.f32 1.0, %v5432_v8  ;;  %v1197_v6 = vmul.f32 %v2378_v1, %v5434_v61  ;;  %v5438_v19 = vld [vmem:[#allocation27_spill] sm:$0xff]  ;;  %v5458_v8 = vld [vmem:[#allocation49_spill] sm:$0xff] }
 0x30c   : > { %v2777_v25 = vpop.eup %2776  ;;  %v1945_v39 = vmul.f32 1.442695, %v1874_v63  ;;  %2442 = vmatpush1.bf16.msra.mxu0 %v2441_v4  ;;  %2470 = vmatpush1.bf16.msra.mxu1 %v2441_v4  ;;  %v1977_v28 = vmul.f32 %v2775_v17, %v5426_v59  ;;  %v2380_v4 = vsel %vm1103_vm5, 1.0, %v5213_v43  ;;  %v5436_v35 = vsub.f32 1.0, %v5435_v54 }
 0x30d   : > { %2786 = vpow2.f32 %v1943_v45  ;;  %v1978_v31 = vmul.f32 %v2777_v25, %v5427_v51  ;;  %vm1104_vm3 = vcmp.lt.f32.partialorder %v5437_v49, 8.0  ;;  %v1198_v48 = vmul.f32 %v2379_v12, %v5438_v19  ;;  %v5441_v25 = vld [vmem:[#allocation66_spill] sm:$0xff] }
 0x30e   : > { %2788 = vpow2.f32 %v1945_v39  ;;  %v1878_v16 = vpop.f32.mrb[26].mxu1  ;;  %v2009_v40 = vmul.f32 %v1977_v28, %v1192_v36  ;;  %v1199_v45 = vmul.f32 %v2380_v4, %v5440_v62  ;;  %v5442_v36 = vsub.f32 1.0, %v5441_v25  ;;  %v5443_v28 = vld [vmem:[#allocation67_spill] sm:$0xff] }
 0x30f   : > { %v2779_v47 = vpop.eup %2778  ;;  %v1947_v18 = vmul.f32 1.442695, %v1878_v16  ;;  %v1880_v26 = vpop.f32.mrb[27].mxu1  ;;  %v2010_v60 = vmul.f32 %v1978_v31, %v1193_v29  ;;  %v2381_v39 = vsel %vm1104_vm3, 1.0, %v5213_v43  ;;  %v5444_v29 = vsub.f32 1.0, %v5443_v28  ;;  %v2026_v28 = vld [vmem:[%s270_s25 + $0x18] sm:$0xff] }
 0x310   : > { %v2781_v30 = vpop.eup %2780  ;;  %v1949_v52 = vmul.f32 1.442695, %v1880_v26  ;;  %v2445_v58 = vpack.c.bf16 %v2009_v40, %v2007_v2  ;;  %v1979_v20 = vmul.f32 %v2779_v47, %v5429_v9  ;;  %v2382_v31 = vsel %vm1105_vm2, 1.0, %v5213_v43  ;;  %v5446_v47 = vld [vmem:[#allocation65_spill] sm:$0xff]  ;;  %v5447_v26 = vld [vmem:[#allocation24_spill] sm:$0xff] }
 0x311   : > { %2790 = vpow2.f32 %v1947_v18  ;;  %v2443_v50 = vpack.c.bf16 %v2010_v60, %v2008_v24  ;;  %v1980_v10 = vmul.f32 %v2781_v30, %v5431_v34  ;;  %vm1107_vm13 = vcmp.lt.f32.partialorder %v5446_v47, 8.0  ;;  %v5448_v30 = vld [vmem:[#allocation38_spill] sm:$0xff] }
 0x312   : > { %2792 = vpow2.f32 %v1949_v52  ;;  %v1884_v11 = vpop.f32.mrb[28].mxu1  ;;  %v2011_v27 = vmul.f32 %v1979_v20, %v1194_v13  ;;  %v5445_v13 = vld [vmem:[#allocation63_spill] sm:$0xff]  ;;  %v1200_v60 = vmul.f32 %v2381_v39, %v5447_v26  ;;  %v5449_v23 = vsub.f32 1.0, %v5448_v30  ;;  %v5451_v20 = vld [vmem:[#allocation33_spill] sm:$0xff] }
 0x313   : > { %v2783_v41 = vpop.eup %2782  ;;  %v1951_v38 = vmul.f32 1.442695, %v1884_v11  ;;  %v1886_v14 = vpop.f32.mrb[29].mxu1  ;;  %2444 = vmatprep.subr.bf16.mxu0 %v2443_v50  ;;  %2463 = vmatprep.subr.bf16.mxu1 %v2443_v50  ;;  %v2012_v22 = vmul.f32 %v1980_v10, %v1195_v33  ;;  %vm1106_vm7 = vcmp.lt.f32.partialorder %v5445_v13, 8.0  ;;  %v5452_v50 = vsub.f32 1.0, %v5451_v20  ;;  %v5453_v10 = vld [vmem:[#allocation34_spill] sm:$0xff] }
 0x314   : > { %v2785_v3 = vpop.eup %2784  ;;  %v1953_v37 = vmul.f32 1.442695, %v1886_v14  ;;  %2446 = vmatpush1.bf16.msra.mxu0 %v2445_v58  ;;  %2471 = vmatpush1.bf16.msra.mxu1 %v2445_v58  ;;  %v1981_v57 = vmul.f32 %v2783_v41, %v5433_v0  ;;  %v5450_v58 = vld [vmem:[#allocation44_spill] sm:$0xff]  ;;  %v2383_v9 = vsel %vm1106_vm7, 1.0, %v5213_v43  ;;  %v2384_v34 = vsel %vm1107_vm13, 1.0, %v5213_v43  ;;  %v5455_v14 = vld [vmem:[#allocation57_spill] sm:$0xff] }
 0x315   : > { %2794 = vpow2.f32 %v1951_v38  ;;  %v1982_v44 = vmul.f32 %v2785_v3, %v5436_v35  ;;  %v1201_v15 = vmul.f32 %v2382_v31, %v5450_v58  ;;  %vm1108_vm15 = vcmp.lt.f32.partialorder %v5453_v10, 8.0  ;;  %v2025_v39 = vld [vmem:[%s270_s25 + $0x10] sm:$0xff] }
 0x316   : > { %2796 = vpow2.f32 %v1953_v37  ;;  %v1890_v42 = vpop.f32.mrb[30].mxu1  ;;  %v2013_v7 = vmul.f32 %v1981_v57, %v1196_v5  ;;  %v5456_v5 = vld [vmem:[#allocation40_spill] sm:$0xff]  ;;  %v1203_v0 = vmul.f32 %v2384_v34, %v5458_v8  ;;  %v2385_v57 = vsel %vm1108_vm15, 1.0, %v5213_v43 }
 0x317   : > { %v2787_v46 = vpop.eup %2786  ;;  %v1955_v32 = vmul.f32 1.442695, %v1890_v42  ;;  %v1892_v2 = vpop.f32.mrb[31].mxu1  ;;  %v2014_v17 = vmul.f32 %v1982_v44, %v1197_v6  ;;  %v5457_v12 = vsub.f32 1.0, %v5456_v5  ;;  %v5459_v6 = vld [vmem:[#allocation30_spill] sm:$0xff] }
 0x318   : > { %v2789_v55 = vpop.eup %2788  ;;  %v1957_v63 = vmul.f32 1.442695, %v1892_v2  ;;  %v2449_v24 = vpack.c.bf16 %v2013_v7, %v2011_v27  ;;  %v1983_v21 = vmul.f32 %v2787_v46, %v5442_v36  ;;  %v5454_v27 = vld [vmem:[#allocation17_spill] sm:$0xff]  ;;  %v5460_v4 = vsub.f32 1.0, %v5459_v6  ;;  %v5461_v46 = vld [vmem:[#allocation54_spill] sm:$0xff]  ;;  %v5464_v2 = vld [vmem:[#allocation52_spill] sm:$0xff] }
 0x319   : > { %2798 = vpow2.f32 %v1955_v32  ;;  %v2447_v59 = vpack.c.bf16 %v2014_v17, %v2012_v22  ;;  %v1984_v51 = vmul.f32 %v2789_v55, %v5444_v29  ;;  %vm1109_vm4 = vcmp.lt.f32.partialorder %v5454_v27, 8.0  ;;  %v5465_v55 = vld [vmem:[#allocation45_spill] sm:$0xff] }
 0x31a   : > { %2800 = vpow2.f32 %v1957_v63  ;;  %v2015_v16 = vmul.f32 %v1983_v21, %v1198_v48  ;;  %v1202_v22 = vmul.f32 %v2383_v9, %v5455_v14  ;;  %v2386_v35 = vsel %vm1109_vm4, 1.0, %v5213_v43  ;;  %v5462_v48 = vld [vmem:[#allocation51_spill] sm:$0xff]  ;;  %v2023_v21 = vld [vmem:[%s270_s25] sm:$0xff] }
 0x31b   : > { %v2791_v40 = vpop.eup %2790  ;;  %2448 = vmatprep.subr.bf16.mxu0 %v2447_v59  ;;  %2464 = vmatprep.subr.bf16.mxu1 %v2447_v59  ;;  %v2016_v33 = vmul.f32 %v1984_v51, %v1199_v45  ;;  %v1204_v19 = vmul.f32 %v2385_v57, %v5461_v46  ;;  %v5463_v53 = vsub.f32 1.0, %v5462_v48  ;;  %v1205_v17 = vmul.f32 %v2386_v35, %v5464_v2  ;;  %v2024_v59 = vld [vmem:[%s270_s25 + $0x8] sm:$0xff] }
 0x31c   : > { %v2793_v18 = vpop.eup %2792  ;;  %2450 = vmatpush1.bf16.msra.mxu0 %v2449_v24  ;;  %2472 = vmatpush1.bf16.msra.mxu1 %v2449_v24  ;;  %v1985_v52 = vmul.f32 %v2791_v40, %v5449_v23  ;;  %v5466_v62 = vsub.f32 1.0, %v5465_v55 }
 0x31d   : > { %v1986_v56 = vmul.f32 %v2793_v18, %v5452_v50 }
 0x31e   : > { %v2017_v1 = vmul.f32 %v1985_v52, %v1200_v60 }
 0x31f   : > { %v2795_v11 = vpop.eup %2794  ;;  %v2018_v41 = vmul.f32 %v1986_v56, %v1201_v15 }
 0x320   : > { %v2797_v38 = vpop.eup %2796  ;;  %v2453_v3 = vpack.c.bf16 %v2017_v1, %v2015_v16  ;;  %v1987_v37 = vmul.f32 %v2795_v11, %v5457_v12 }
 0x321   : > { %v2451_v61 = vpack.c.bf16 %v2018_v41, %v2016_v33  ;;  %v1988_v54 = vmul.f32 %v2797_v38, %v5460_v4 }
 0x322   : > { %v2019_v44 = vmul.f32 %v1987_v37, %v1202_v22 }
 0x323   : > { %v2799_v49 = vpop.eup %2798  ;;  %2452 = vmatprep.subr.bf16.mxu0 %v2451_v61  ;;  %2465 = vmatprep.subr.bf16.mxu1 %v2451_v61  ;;  %v2020_v42 = vmul.f32 %v1988_v54, %v1203_v0 }
 0x324   : > { %v2801_v7 = vpop.eup %2800  ;;  %2454 = vmatpush1.bf16.msra.mxu0 %v2453_v3  ;;  %2473 = vmatpush1.bf16.msra.mxu1 %v2453_v3  ;;  %v1989_v32 = vmul.f32 %v2799_v49, %v5463_v53 }
 0x325   : > { %v1990_v45 = vmul.f32 %v2801_v7, %v5466_v62 }
 0x326   : > { %v2021_v63 = vmul.f32 %v1989_v32, %v1204_v19 }
 0x327   : > { %v2022_v24 = vmul.f32 %v1990_v45, %v1205_v17 }
 0x328   : > { %v2457_v25 = vpack.c.bf16 %v2021_v63, %v2019_v44 }
 0x329   : > { %v2455_v36 = vpack.c.bf16 %v2022_v24, %v2020_v42 }
 0x32b   : > { %2456 = vmatprep.subr.bf16.mxu0 %v2455_v36  ;;  %2466 = vmatprep.subr.bf16.mxu1 %v2455_v36 }
 0x32c   : > { %2458 = vmatpush1.bf16.msra.mxu0 %v2457_v25  ;;  %2474 = vmatpush1.bf16.msra.mxu1 %v2457_v25 }
 0x32f   : > { %2092 = vmatmul.mubr.f32.vlgmr.msra.gmra.mrb[32].mxu0 %v2023_v21  ;;  %2104 = vmatmul.mubr.f32.vlgmr.msra.gmra.mrb[32].mxu1 %v2025_v39 }
 0x330   : > { %2097 = vmatprep.mubr.f32.mxu0 %v5213_v43  ;;  %2109 = vmatprep.mubr.f32.mxu1 %v5213_v43 }
 0x333   : > { %2098 = vmatmul.mubr.f32.gmra.mrb[34].mxu0 %v2024_v59  ;;  %2110 = vmatmul.mubr.f32.gmra.mrb[34].mxu1 %v2026_v28 }
 0x402   : > { %v2093_v29 = vpop.f32.mrb[32].mxu0  ;;  %v2105_v51 = vpop.f32.mrb[32].mxu1 }
 0x403   : > { %2116 = vst [vmem:[%s299_s11] sm:$0xff] %v2093_v29  ;;  %2120 = vst [vmem:[%s299_s11 + $0x20] sm:$0xff] %v2105_v51  ;;  %v2095_v31 = vpop.f32.mrb[33].mxu0  ;;  %v2107_v13 = vpop.f32.mrb[33].mxu1 }
 0x404   : > { %2117 = vst [vmem:[%s299_s11 + $0x8] sm:$0xff] %v2095_v31  ;;  %2121 = vst [vmem:[%s299_s11 + $0x28] sm:$0xff] %v2107_v13 }
 0x406   : > { %v2099_v43 = vpop.f32.mrb[34].mxu0  ;;  %v2111_v16 = vpop.f32.mrb[34].mxu1 }
 0x407   : > { %2118 = vst [vmem:[%s299_s11 + $0x10] sm:$0xff] %v2099_v43  ;;  %2122 = vst [vmem:[%s299_s11 + $0x30] sm:$0xff] %v2111_v16  ;;  %v2101_v40 = vpop.f32.mrb[35].mxu0  ;;  %v2113_v47 = vpop.f32.mrb[35].mxu1 }
 0x408   : > { %2119 = vst [vmem:[%s299_s11 + $0x18] sm:$0xff] %v2101_v40  ;;  %2123 = vst [vmem:[%s299_s11 + $0x38] sm:$0xff] %v2113_v47 }
 0x409   : > { %2931 = shalt.err (!%p2928_p3)
}
 0x40a   : > { %s2932_s7 = scalar_lea.hbm %s4969_s24, 1024  ;;  %s2936_s5 = scalar_lea.hbm %s5022_s4, 2048 }
 0x40b   : > { %p2933_p2 = scmp.ne.s32.totalorder %s4969_s24, %s2932_s7  ;;  %p2937_p13 = scmp.lt.u32.totalorder %s4969_s24, %s5022_s4 }
 0x40c   : > { %p2938_p6 = scmp.lt.u32.totalorder %s2936_s5, %s2932_s7  ;;  %p2940_p5 = scmp.lt.u32.totalorder %s2932_s7, %s4969_s24 }
 0x40d   : > { %p2934_p7 = pnand %p2933_p2, %p5467_p11 }
 0x40e   : > { %p2939_p12 = por %p2938_p6, %p2937_p13 }
 0x40f   : > { %p2935_p8 = pneg %p2934_p7 }
 0x410   : > { %p2941_p4 = por %p2940_p5, %p2939_p12 }
 0x412   : > { %p2942_p9 = pnand %p2941_p4, %p2935_p8 }
 0x414   : > { %2945 = shalt.err (!%p2942_p9)
}
 0x415   : > { %s3024_s14 = smov 256   ;;  %s3025_s21 = smov 16  }
 0x416   : > { %2487 = dma.vmem_to_hbm [thread:$0]  (%p5467_p11), %s4964_s23, 1024, %s4969_s24, %s2125_s18, %s3024_s14, %s3024_s14, %s3025_s21  }
 0x417 PF: > { %s5468_s25 = sld [smem:[#allocation14_spill]]  ;;  %s2155_s22 = sand.u32 1, %s2988_s15  }
 0x418   : > { %p5469_p10 = scmp.ne.s32.totalorder %s5152_s27, 0  ;;  %s2156_s11 = scalar_lea.sflag [#allocation4], %s2155_s22 }
 0x41d   : > { %p5470_p1 = scmp.ge.s32.totalorder %s5468_s25, 2 }
 0x41f   : > { %p2504_p0 = pnand %p5470_p1, %p5469_p10 }
 0x421   : > { %2983 = dma.done.wait (!%p2504_p0), %s2156_s11, 1024  }
 0x422   : > { %2985 = vsyncadd (!%p2504_p0), %s2156_s11, 4294966272  ;;  %s19_s20 = sadd.s32 1, %s5468_s25   ;;  %s5471_s9 = sld [smem:[#allocation16_spill]] }
 0x423   : > { %p16_p3 = scmp.ge.s32.totalorder %s19_s20, 4   ;;  %s5472_s26 = sld [smem:[#allocation15_spill]] }
 0x424   : > { %s5473_s15 = smov %s2992_s16  ;;  %s5474_s16 = smov %s2996_s17 }
 0x425   : > { %s5476_s18 = smov %s3004_s19  ;;  %18 = sbr.rel (!%p16_p3) target bundleno = 9 (0x9), region = 100 }
 0x428   : > { %s5475_s17 = smov %s5471_s9 }
 0x429   : > { %s5477_s19 = smov %s5472_s26 }
 0x42c   :  { %2161 = vsyncpa [#allocation3], 1 }
 0x42d   :  { %2163 = vsyncpa [#allocation3 + $0x1], 1 }
 0x42e   :  { %2164 = vsyncpa [#allocation6], 1 }
 0x42f   :  { %2165 = vsyncpa [#allocation4], 1 }
 0x430   :  { %2167 = vsyncpa [#allocation4 + $0x1], 1 }

</bundles_post_ra>
